<compile_context>
chip_gen: v6e
topology: v6e:2x2x1
jax: 0.10.0
libtpu: 0.0.40
codegen_flags: <defaults>
</compile_context>

<pallas_src>
import math
from functools import partial

import jax
import jax.numpy as jnp
from jax.experimental import pallas as pl
from jax.experimental.pallas import tpu as pltpu

F32 = jnp.float32
BF16 = jnp.bfloat16

WIDTH_LIST = [8, 16, 32, 64, 128]
DEPTH_LIST = [1, 2, 2, 2, 2]
EXPAND_RATIO = 4
BN_EPS = 1e-5

_PARITY = ((0, 0), (0, 1), (1, 0), (1, 1))


def _apply_act(y, act):
    if act == "hswish":          # nn.Hardswish
        return y * jnp.clip(y + 3.0, 0.0, 6.0) * (1.0 / 6.0)
    if act == "silu":            # nn.SiLU
        return y * jax.nn.sigmoid(y)
    return y


def _bf16_dot(a, b):
    # MXU-native bf16 matmul with f32 accumulation (astype is a no-op on bf16 weights).
    return jnp.dot(a.astype(BF16), b.astype(BF16), preferred_element_type=jnp.float32)


def _pick_tm(M, cap=512):
    """Row tile: multiple of 8 that divides M; prefer >=2 grid steps (v7x 2 TCs)."""
    if M <= 8 or M % 8 != 0:
        return M
    tm = 8
    while tm * 2 <= min(cap, M // 2) and M % (tm * 2) == 0:
        tm *= 2
    return tm


def _scan_orders(H, W):
    """Static row-visit orders (hw fwd, wh fwd, hw bwd, wh bwd) over L=H*W positions."""
    L = H * W
    hw = list(range(L))
    wh = [h * W + w for w in range(W) for h in range(H)]
    return [hw, wh, hw[::-1], wh[::-1]]


# ---------------------------------------------------------------------------
# Pallas kernels
# ---------------------------------------------------------------------------

def _mm_kernel(x_ref, w_ref, s_ref, b_ref, o_ref, *, act):
    # x:(tm,K) w:(K,N) s,b:(1,N) -> o:(tm,N)
    acc = _bf16_dot(x_ref[...], w_ref[...])
    o_ref[...] = _apply_act(acc * s_ref[...] + b_ref[...], act)


@partial(jax.jit, static_argnames=("act",))
def matmul_bn_act(x, w, scale, bias, *, act="none"):
    """y = act((x @ w) * scale + bias). x:(M,K) w:(K,N) scale,bias:(N,)."""
    M, K = x.shape
    N = w.shape[1]
    tm = _pick_tm(M)
    return pl.pallas_call(
        partial(_mm_kernel, act=act),
        grid=(M // tm,),
        in_specs=[
            pl.BlockSpec((tm, K), lambda i: (i, 0)),
            pl.BlockSpec((K, N), lambda i: (0, 0)),
            pl.BlockSpec((1, N), lambda i: (0, 0)),
            pl.BlockSpec((1, N), lambda i: (0, 0)),
        ],
        out_specs=pl.BlockSpec((tm, N), lambda i: (i, 0)),
        out_shape=jax.ShapeDtypeStruct((M, N), F32),
        compiler_params=pltpu.CompilerParams(dimension_semantics=("parallel",)),
    )(x, w, scale.reshape(1, N), bias.reshape(1, N))


# ---- fused DSConv / MBConv (whole block in one kernel, per batch element) ----

def _dw_then_project(h, x2, wd_ref, sd_ref, bd_ref, w2_ref, s2_ref, b2_ref,
                     o_ref, mid_ref, *, H, W, act_dw, residual):
    """h:(H*W,Cm) rows -> zero-padded dw3x3 (+act) -> 1x1 project (+residual)."""
    Cm = mid_ref.shape[-1]
    # zero-init scratch so the 1-pixel conv border stays zero (padding=1),
    # then one whole-interior store (W is a multiple of 8 for all stride-1 blocks).
    mid_ref[...] = jnp.zeros(mid_ref.shape, jnp.float32)
    mid_ref[1:H + 1, 1:W + 1, :] = h.reshape(H, W, Cm)
    wv = wd_ref[...]                                   # (9, Cm)
    acc = jnp.zeros((H, W, Cm), jnp.float32)
    for i in range(3):
        for j in range(3):
            acc = acc + mid_ref[i:i + H, j:j + W, :] * wv[i * 3 + j]
    hd = _apply_act(acc * sd_ref[0] + bd_ref[0], act_dw)
    out = _bf16_dot(hd.reshape(H * W, Cm), w2_ref[...]) * s2_ref[...] + b2_ref[...]
    if residual:
        out = out + x2
    o_ref[0] = out


def _mbconv_s1_kernel(x_ref, w1_ref, s1_ref, b1_ref, wd_ref, sd_ref, bd_ref,
                      w2_ref, s2_ref, b2_ref, o_ref, mid_ref,
                      *, H, W, act1, act_dw, residual):
    x2 = x_ref[0]                                      # (H*W, Cin)
    h = _apply_act(_bf16_dot(x2, w1_ref[...]) * s1_ref[...] + b1_ref[...], act1)
    _dw_then_project(h, x2, wd_ref, sd_ref, bd_ref, w2_ref, s2_ref, b2_ref,
                     o_ref, mid_ref, H=H, W=W, act_dw=act_dw, residual=residual)


def _dsconv_kernel(x_ref, wd_ref, sd_ref, bd_ref, w2_ref, s2_ref, b2_ref,
                   o_ref, mid_ref, *, H, W, act_dw, residual):
    x2 = x_ref[0]                                      # (H*W, C)
    _dw_then_project(x2, x2, wd_ref, sd_ref, bd_ref, w2_ref, s2_ref, b2_ref,
                     o_ref, mid_ref, H=H, W=W, act_dw=act_dw, residual=residual)


def _mbconv_s2_kernel(x_ref, w1_ref, s1_ref, b1_ref, wd_ref, sd_ref, bd_ref,
                      w2_ref, s2_ref, b2_ref, o_ref, par_ref,
                      *, Ho, Wo, act1, act_dw):
    """Stride-2 MBConv via parity decomposition; emits (Ho,Wo) output directly."""
    Cm = par_ref.shape[-1]
    x2 = x_ref[0]                                      # (4*Ho*Wo, Cin), parity-ordered
    h = _apply_act(_bf16_dot(x2, w1_ref[...]) * s1_ref[...] + b1_ref[...], act1)
    # par_ref[p*2+q][R, C] represents padded_mid[2R+p, 2C+q]; zero = conv padding.
    par_ref[...] = jnp.zeros(par_ref.shape, jnp.float32)
    whole = (Wo % 8 == 0)
    for idx, (pa, pb) in enumerate(_PARITY):
        pi = (1 - pa) * 2 + (1 - pb)
        base = idx * Ho * Wo
        if whole:
            par_ref[pi, pa:pa + Ho, pb:pb + Wo, :] = (
                h[base:base + Ho * Wo].reshape(Ho, Wo, Cm))
        else:                                          # Ho <= 4 (stages 3-4)
            for r in range(Ho):
                par_ref[pi, pa + r, pb:pb + Wo, :] = h[base + r * Wo: base + (r + 1) * Wo, :]
    wv = wd_ref[...]
    acc = jnp.zeros((Ho, Wo, Cm), jnp.float32)
    for i in range(3):
        for j in range(3):
            pi = (i % 2) * 2 + (j % 2)
            acc = acc + par_ref[pi, i // 2:i // 2 + Ho, j // 2:j // 2 + Wo, :] * wv[i * 3 + j]
    hd = _apply_act(acc * sd_ref[0] + bd_ref[0], act_dw)
    if whole:
        flat = hd.reshape(Ho * Wo, Cm)
    else:
        flat = jnp.concatenate([hd[r] for r in range(Ho)], axis=0)
    o_ref[0] = _bf16_dot(flat, w2_ref[...]) * s2_ref[...] + b2_ref[...]


def _conv_param_specs(Cin, Cm, Cout):
    return [
        pl.BlockSpec((Cin, Cm), lambda b: (0, 0)),
        pl.BlockSpec((1, Cm), lambda b: (0, 0)),
        pl.BlockSpec((1, Cm), lambda b: (0, 0)),
        pl.BlockSpec((9, Cm), lambda b: (0, 0)),
        pl.BlockSpec((1, Cm), lambda b: (0, 0)),
        pl.BlockSpec((1, Cm), lambda b: (0, 0)),
        pl.BlockSpec((Cm, Cout), lambda b: (0, 0)),
        pl.BlockSpec((1, Cout), lambda b: (0, 0)),
        pl.BlockSpec((1, Cout), lambda b: (0, 0)),
    ]


@partial(jax.jit, static_argnames=("act1", "act_dw", "residual"))
def mbconv_s1(x, p, *, act1="hswish", act_dw="hswish", residual=True):
    """Fused stride-1 MBConv: expand(+act) -> dw3x3(+act) -> project (+residual)."""
    B, H, W, Cin = x.shape
    Cm = p["inv"]["w"].shape[1]
    Cout = p["pw"]["w"].shape[1]
    x2 = x.reshape(B, H * W, Cin)
    out = pl.pallas_call(
        partial(_mbconv_s1_kernel, H=H, W=W, act1=act1, act_dw=act_dw, residual=residual),
        grid=(B,),
        in_specs=[pl.BlockSpec((1, H * W, Cin), lambda b: (b, 0, 0))]
                 + _conv_param_specs(Cin, Cm, Cout),
        out_specs=pl.BlockSpec((1, H * W, Cout), lambda b: (b, 0, 0)),
        out_shape=jax.ShapeDtypeStruct((B, H * W, Cout), F32),
        scratch_shapes=[pltpu.VMEM((H + 2, W + 2, Cm), F32)],
        compiler_params=pltpu.CompilerParams(dimension_semantics=("parallel",)),
    )(x2, p["inv"]["w"], p["inv"]["s"].reshape(1, Cm), p["inv"]["b"].reshape(1, Cm),
      p["dw"]["w"], p["dw"]["s"].reshape(1, Cm), p["dw"]["b"].reshape(1, Cm),
      p["pw"]["w"], p["pw"]["s"].reshape(1, Cout), p["pw"]["b"].reshape(1, Cout))
    return out.reshape(B, H, W, Cout)


@partial(jax.jit, static_argnames=("act1", "act_dw"))
def mbconv_s2(x, p, *, act1="hswish", act_dw="hswish"):
    """Fused stride-2 MBConv; downsampled output computed directly (no subsample)."""
    B, H, W, Cin = x.shape
    assert H % 2 == 0 and W % 2 == 0, "stride-2 MBConv assumes even spatial dims"
    Ho, Wo = H // 2, W // 2
    Cm = p["inv"]["w"].shape[1]
    Cout = p["pw"]["w"].shape[1]
    parts = [x[:, a::2, b::2, :].reshape(B, Ho * Wo, Cin) for (a, b) in _PARITY]
    x2 = jnp.concatenate(parts, axis=1)                # (B, 4*Ho*Wo, Cin)
    out = pl.pallas_call(
        partial(_mbconv_s2_kernel, Ho=Ho, Wo=Wo, act1=act1, act_dw=act_dw),
        grid=(B,),
        in_specs=[pl.BlockSpec((1, 4 * Ho * Wo, Cin), lambda b: (b, 0, 0))]
                 + _conv_param_specs(Cin, Cm, Cout),
        out_specs=pl.BlockSpec((1, Ho * Wo, Cout), lambda b: (b, 0, 0)),
        out_shape=jax.ShapeDtypeStruct((B, Ho * Wo, Cout), F32),
        scratch_shapes=[pltpu.VMEM((4, Ho + 1, Wo + 1, Cm), F32)],
        compiler_params=pltpu.CompilerParams(dimension_semantics=("parallel",)),
    )(x2, p["inv"]["w"], p["inv"]["s"].reshape(1, Cm), p["inv"]["b"].reshape(1, Cm),
      p["dw"]["w"], p["dw"]["s"].reshape(1, Cm), p["dw"]["b"].reshape(1, Cm),
      p["pw"]["w"], p["pw"]["s"].reshape(1, Cout), p["pw"]["b"].reshape(1, Cout))
    return out.reshape(B, Ho, Wo, Cout)


@jax.jit
def dsconv_fused(x, p):
    """Fused DSConv: dw3x3+BN+hswish -> pointwise+BN (+residual)."""
    B, H, W, C = x.shape
    Cout = p["pw"]["w"].shape[1]
    x2 = x.reshape(B, H * W, C)
    out = pl.pallas_call(
        partial(_dsconv_kernel, H=H, W=W, act_dw="hswish", residual=True),
        grid=(B,),
        in_specs=[
            pl.BlockSpec((1, H * W, C), lambda b: (b, 0, 0)),
            pl.BlockSpec((9, C), lambda b: (0, 0)),
            pl.BlockSpec((1, C), lambda b: (0, 0)),
            pl.BlockSpec((1, C), lambda b: (0, 0)),
            pl.BlockSpec((C, Cout), lambda b: (0, 0)),
            pl.BlockSpec((1, Cout), lambda b: (0, 0)),
            pl.BlockSpec((1, Cout), lambda b: (0, 0)),
        ],
        out_specs=pl.BlockSpec((1, H * W, Cout), lambda b: (b, 0, 0)),
        out_shape=jax.ShapeDtypeStruct((B, H * W, Cout), F32),
        scratch_shapes=[pltpu.VMEM((H + 2, W + 2, C), F32)],
        compiler_params=pltpu.CompilerParams(dimension_semantics=("parallel",)),
    )(x2, p["dw"]["w"], p["dw"]["s"].reshape(1, C), p["dw"]["b"].reshape(1, C),
      p["pw"]["w"], p["pw"]["s"].reshape(1, Cout), p["pw"]["b"].reshape(1, Cout))
    return out.reshape(B, H, W, Cout)


# ---- fully fused VSSBlock (LN -> in_proj -> dw3x3+SiLU -> SS2D -> out_proj + res) ----

def _vss_kernel(x_ref, g1_ref, b1_ref, win_ref, cw_ref, cb_ref,
                wdt_ref, wb_ref, wc_ref, a_ref, d_ref, dtb_ref,
                g2_ref, b2_ref, wout_ref, o_ref, pad_ref,
                *, H, W, N, eps_ln, eps_out):
    L = H * W
    Dm = cw_ref.shape[-1]

    x = x_ref[0]                                        # (L, C) f32, hw order

    # --- LayerNorm(eps=1e-6) + in_proj ---
    mu = jnp.mean(x, axis=-1, keepdims=True)
    xc0 = x - mu
    var = jnp.mean(xc0 * xc0, axis=-1, keepdims=True)
    xn = xc0 * jax.lax.rsqrt(var + eps_ln) * g1_ref[...] + b1_ref[...]
    xz = _bf16_dot(xn, win_ref[...])                    # (L, 2*Dm)
    xi = xz[:, :Dm]
    z = xz[:, Dm:]

    # --- depthwise 3x3 conv (pad=1, bias) + SiLU (zero-padded in VMEM scratch) ---
    pad_ref[...] = jnp.zeros(pad_ref.shape, jnp.float32)
    for r in range(H):                                  # H <= 4 here
        pad_ref[1 + r, 1:W + 1, :] = xi[r * W:(r + 1) * W, :]
    wv = cw_ref[...]
    acc = jnp.zeros((H, W, Dm), jnp.float32)
    for i in range(3):
        for j in range(3):
            acc = acc + pad_ref[i:i + H, j:j + W, :] * wv[i * 3 + j]
    xc = _apply_act(acc + cb_ref[0], "silu")            # (H, W, Dm)
    xflat = jnp.concatenate([xc[r] for r in range(H)], axis=0)    # (L, Dm), hw order
    xb = xflat.astype(BF16)

    # --- 4-direction projection + selective scan ---
    # Direction handling uses static row-visit orders (no in-kernel transpose/flip).
    orders = _scan_orders(H, W)
    y_total = None
    for k in range(4):
        dt = jnp.dot(xb, wdt_ref[k], preferred_element_type=jnp.float32)          # (L, Dm)
        BT = jnp.einsum("nd,ld->nl", wb_ref[k], xb,
                        preferred_element_type=jnp.float32)                        # (N, L)
        CT = jnp.einsum("nd,ld->nl", wc_ref[k], xb,
                        preferred_element_type=jnp.float32)                        # (N, L)
        delta = jax.nn.softplus(dt + dtb_ref[k])                                   # (L, Dm)
        dxs = delta * xflat                                                        # (L, Dm)
        A_k = a_ref[k]                                                             # (N, Dm)
        # hoisted out of the serial recurrence (independent of the state h):
        dA_steps = [jnp.exp(delta[l:l + 1, :] * A_k) for l in range(L)]            # (N, Dm)
        dU_steps = [dxs[l:l + 1, :] * BT[:, l:l + 1] for l in range(L)]            # (N, Dm)
        h = jnp.zeros((N, Dm), jnp.float32)
        y_rows = [None] * L
        order = orders[k]
        for t in range(L):        # serial chain is just mul+add per step
            p = order[t]
            h = dA_steps[p] * h + dU_steps[p]
            y_rows[p] = jnp.sum(CT[:, p:p + 1] * h, axis=0, keepdims=True)         # (1, Dm)
        y_dir = jnp.concatenate(y_rows, axis=0)                                    # (L, Dm)
        y_total = y_dir if y_total is None else y_total + y_dir
    # D*x contribution is identical per spatial position across directions -> hoisted.
    y = y_total + xflat * jnp.sum(d_ref[...], axis=0)                              # (L, Dm)

    # --- out_norm (LayerNorm eps=1e-5) * silu(z) -> out_proj, residual add ---
    mu2 = jnp.mean(y, axis=-1, keepdims=True)
    yc = y - mu2
    var2 = jnp.mean(yc * yc, axis=-1, keepdims=True)
    yn = yc * jax.lax.rsqrt(var2 + eps_out) * g2_ref[...] + b2_ref[...]
    gated = yn * (z * jax.nn.sigmoid(z))
    o_ref[0] = x + _bf16_dot(gated, wout_ref[...])


@jax.jit
def vss_block_fused(x, p):
    """One pallas_call per VSSBlock: x + SS2D(LN(x)) (PermuteToVSS/Back are no-ops in NHWC)."""
    B, H, W, C = x.shape
    L = H * W
    sp = p["ss2d"]
    Dm = sp["conv_w"].shape[-1]
    N = sp["wB"].shape[1]
    x2 = x.reshape(B, L, C)
    out = pl.pallas_call(
        partial(_vss_kernel, H=H, W=W, N=N, eps_ln=1e-6, eps_out=1e-5),
        grid=(B,),
        in_specs=[
            pl.BlockSpec((1, L, C), lambda b: (b, 0, 0)),
            pl.BlockSpec((1, C), lambda b: (0, 0)),          # ln1 gamma
            pl.BlockSpec((1, C), lambda b: (0, 0)),          # ln1 beta
            pl.BlockSpec((C, 2 * Dm), lambda b: (0, 0)),     # in_proj (bf16)
            pl.BlockSpec((9, Dm), lambda b: (0, 0)),         # dw conv weight
            pl.BlockSpec((1, Dm), lambda b: (0, 0)),         # dw conv bias
            pl.BlockSpec((4, Dm, Dm), lambda b: (0, 0, 0)),  # x_proj∘dt_proj (bf16)
            pl.BlockSpec((4, N, Dm), lambda b: (0, 0, 0)),   # B projection (bf16, transposed)
            pl.BlockSpec((4, N, Dm), lambda b: (0, 0, 0)),   # C projection (bf16, transposed)
            pl.BlockSpec((4, N, Dm), lambda b: (0, 0, 0)),   # A
            pl.BlockSpec((4, 1, Dm), lambda b: (0, 0, 0)),   # D
            pl.BlockSpec((4, 1, Dm), lambda b: (0, 0, 0)),   # dt bias
            pl.BlockSpec((1, Dm), lambda b: (0, 0)),         # out_norm gamma
            pl.BlockSpec((1, Dm), lambda b: (0, 0)),         # out_norm beta
            pl.BlockSpec((Dm, C), lambda b: (0, 0)),         # out_proj (bf16)
        ],
        out_specs=pl.BlockSpec((1, L, C), lambda b: (b, 0, 0)),
        out_shape=jax.ShapeDtypeStruct((B, L, C), F32),
        scratch_shapes=[pltpu.VMEM((H + 2, W + 2, Dm), F32)],
        compiler_params=pltpu.CompilerParams(dimension_semantics=("parallel",)),
    )(x2, p["ln1_g"].reshape(1, C), p["ln1_b"].reshape(1, C), sp["in_proj_w"],
      sp["conv_w"], sp["conv_b"].reshape(1, Dm), sp["wdt"], sp["wB"], sp["wC"],
      sp["A"], sp["D"], sp["dt_bias"], sp["out_ln_g"].reshape(1, Dm),
      sp["out_ln_b"].reshape(1, Dm), sp["out_proj_w"])
    return out.reshape(B, H, W, C)


# ---------------------------------------------------------------------------
# Model building blocks
# ---------------------------------------------------------------------------

def stem_conv(x, p):
    """3x3 stride-2 conv (pad=1) + BN + hswish, via im2col + Pallas matmul."""
    B, H, W, C = x.shape
    Ho, Wo = (H + 1) // 2, (W + 1) // 2
    xp = jnp.pad(x, ((0, 0), (1, 1), (1, 1), (0, 0)))
    cols = []
    for i in range(3):
        for j in range(3):
            cols.append(xp[:, i:i + 2 * Ho:2, j:j + 2 * Wo:2, :])
    cols = jnp.concatenate(cols, axis=-1)                     # (B, Ho, Wo, 9*C)
    y = matmul_bn_act(cols.reshape(-1, 9 * C), p["w"], p["s"], p["b"], act="hswish")
    return y.reshape(B, Ho, Wo, -1)


def efficientvit_backbone_forward(x_nchw, params):
    out = {"input": x_nchw}
    x = jnp.transpose(x_nchw, (0, 2, 3, 1)).astype(F32)        # NCHW -> NHWC

    # stage0: stem conv + (DSConv residual block) x depth_list[0]
    x = stem_conv(x, params["stem"])
    for dsp in params["stem_ds"]:
        x = dsconv_fused(x, dsp)                               # residual fused in-kernel
    out["stage0"] = jnp.transpose(x, (0, 3, 1, 2))

    # stages 1-2: MBConv stages (first block stride-2, no residual)
    for sid in (1, 2):
        blocks = params[f"stage{sid}"]
        x = mbconv_s2(x, blocks[0])
        for bp in blocks[1:]:
            x = mbconv_s1(x, bp)
        out[f"stage{sid}"] = jnp.transpose(x, (0, 3, 1, 2))

    # stages 3-4: fewer_norm MBConv downsample + fully fused VSS (SS2D) blocks
    for sid in (3, 4):
        sp = params[f"stage{sid}"]
        x = mbconv_s2(x, sp["mb"])
        for vp in sp["vss"]:
            x = vss_block_fused(x, vp)
        out[f"stage{sid}"] = jnp.transpose(x, (0, 3, 1, 2))

    out["stage_final"] = out["stage4"]
    return out


# ---------------------------------------------------------------------------
# Deterministic parameter initialization (synthetic)
# ---------------------------------------------------------------------------

class _Keys:
    def __init__(self, key):
        self._key = key

    def __call__(self):
        self._key, sub = jax.random.split(self._key)
        return sub


def _init_bn_fold(kg, c):
    gamma = 1.0 + 0.1 * jax.random.normal(kg(), (c,), F32)
    beta = 0.1 * jax.random.normal(kg(), (c,), F32)
    mean = 0.1 * jax.random.normal(kg(), (c,), F32)
    var = jax.random.uniform(kg(), (c,), F32, 0.5, 1.5)
    scale = gamma / jnp.sqrt(var + BN_EPS)
    bias = beta - mean * scale
    return scale, bias


def _init_pw(kg, cin, cout, norm=True, use_bias=False):
    w = (jax.random.normal(kg(), (cin, cout), F32) / math.sqrt(cin)).astype(BF16)
    if norm:
        s, b = _init_bn_fold(kg, cout)
    elif use_bias:
        s, b = jnp.ones((cout,), F32), 0.1 * jax.random.normal(kg(), (cout,), F32)
    else:
        s, b = jnp.ones((cout,), F32), jnp.zeros((cout,), F32)
    return {"w": w, "s": s, "b": b}


def _init_dw(kg, c, norm=True, use_bias=False):
    w = 0.2 * jax.random.normal(kg(), (9, c), F32)     # 3x3 depthwise, stored (9, C)
    if norm:
        s, b = _init_bn_fold(kg, c)
    elif use_bias:
        s, b = jnp.ones((c,), F32), 0.1 * jax.random.normal(kg(), (c,), F32)
    else:
        s, b = jnp.ones((c,), F32), jnp.zeros((c,), F32)
    return {"w": w, "s": s, "b": b}


def _init_ss2d(kg, d_model):
    d_inner = 2 * d_model
    d_state = 16
    dt_rank = math.ceil(d_model / 16)
    c_proj = dt_rank + 2 * d_state
    p = {}
    p["in_proj_w"] = (jax.random.normal(kg(), (d_model, 2 * d_inner), F32)
                      / math.sqrt(d_model)).astype(BF16)
    p["conv_w"] = 0.2 * jax.random.normal(kg(), (9, d_inner), F32)
    p["conv_b"] = 0.1 * jax.random.normal(kg(), (d_inner,), F32)
    x_proj_w = jax.random.normal(kg(), (4, d_inner, c_proj), F32) / math.sqrt(d_inner)
    dt_std = dt_rank ** -0.5
    dt_proj_w = jax.random.uniform(kg(), (4, dt_rank, d_inner), F32, -dt_std, dt_std)
    # precompose: dts = (x @ Wx[:, :r]) @ Wdt  ==  x @ (Wx[:, :r] @ Wdt)
    w_dt = jnp.einsum("kdr,krm->kdm", x_proj_w[:, :, :dt_rank], dt_proj_w)   # (4,Dm,Dm)
    p["wdt"] = w_dt.astype(BF16)
    p["wB"] = jnp.swapaxes(x_proj_w[:, :, dt_rank:dt_rank + d_state], 1, 2).astype(BF16)
    p["wC"] = jnp.swapaxes(x_proj_w[:, :, dt_rank + d_state:], 1, 2).astype(BF16)
    dt = jnp.exp(jax.random.uniform(kg(), (4, d_inner), F32)
                 * (math.log(0.1) - math.log(0.001)) + math.log(0.001))
    dt = jnp.maximum(dt, 1e-4)
    p["dt_bias"] = (dt + jnp.log(-jnp.expm1(-dt))).reshape(4, 1, d_inner)   # inv-softplus
    p["A"] = -jnp.array(jnp.broadcast_to(
        jnp.arange(1, d_state + 1, dtype=F32)[None, :, None], (4, d_state, d_inner)))
    p["D"] = jnp.ones((4, 1, d_inner), F32)
    p["out_ln_g"] = jnp.ones((d_inner,), F32)
    p["out_ln_b"] = jnp.zeros((d_inner,), F32)
    p["out_proj_w"] = (jax.random.normal(kg(), (d_inner, d_model), F32)
                       / math.sqrt(d_inner)).astype(BF16)
    return p


def init_params(key):
    kg = _Keys(key)
    params = {}
    # input stem: 3x3 s2 conv (in=3) + depth_list[0] DSConv residual blocks
    params["stem"] = _init_pw(kg, 27, WIDTH_LIST[0], norm=True)     # im2col K = 3*3*3
    params["stem_ds"] = [
        {"dw": _init_dw(kg, WIDTH_LIST[0], norm=True),
         "pw": _init_pw(kg, WIDTH_LIST[0], WIDTH_LIST[0], norm=True)}
        for _ in range(DEPTH_LIST[0])
    ]
    in_ch = WIDTH_LIST[0]
    # stages 1-2: MBConv (expand_ratio=4), first block stride 2
    for sid, (w, d) in enumerate(zip(WIDTH_LIST[1:3], DEPTH_LIST[1:3]), start=1):
        blocks = []
        for _ in range(d):
            mid = round(in_ch * EXPAND_RATIO)
            blocks.append({
                "inv": _init_pw(kg, in_ch, mid, norm=True),
                "dw": _init_dw(kg, mid, norm=True),
                "pw": _init_pw(kg, mid, w, norm=True),
            })
            in_ch = w
        params[f"stage{sid}"] = blocks
    # stages 3-4: fewer_norm MBConv downsample + VSSBlocks
    for sid, (w, d) in enumerate(zip(WIDTH_LIST[3:], DEPTH_LIST[3:]), start=3):
        mid = round(in_ch * EXPAND_RATIO)
        mb = {
            "inv": _init_pw(kg, in_ch, mid, norm=False, use_bias=True),
            "dw": _init_dw(kg, mid, norm=False, use_bias=True),
            "pw": _init_pw(kg, mid, w, norm=True),
        }
        vss = []
        for _ in range(d):
            vss.append({
                "ln1_g": jnp.ones((w,), F32),
                "ln1_b": jnp.zeros((w,), F32),
                "ss2d": _init_ss2d(kg, w),
            })
        in_ch = w
        params[f"stage{sid}"] = {"mb": mb, "vss": vss}
    return params


# ---------------------------------------------------------------------------

if __name__ == "__main__":
    key = jax.random.PRNGKey(0)
    pkey, xkey = jax.random.split(key)
    params = init_params(pkey)

    # input (NCHW, matching the PyTorch module): batch=2, 3 channels, 64x64
    x = jax.random.normal(xkey, (2, 3, 64, 64), F32)

    fwd = jax.jit(efficientvit_backbone_forward)
    outs = jax.block_until_ready(fwd(x, params))

    expected = {
        "input": (2, 3, 64, 64),
        "stage0": (2, 8, 32, 32),
        "stage1": (2, 16, 16, 16),
        "stage2": (2, 32, 8, 8),
        "stage3": (2, 64, 4, 4),
        "stage4": (2, 128, 2, 2),
        "stage_final": (2, 128, 2, 2),
    }
    for name, shp in expected.items():
        assert outs[name].shape == shp, (name, outs[name].shape, shp)
        assert bool(jnp.all(jnp.isfinite(outs[name]))), f"non-finite values in {name}"

    print("KERNEL_OK")
</pallas_src>

<mosaic_0001>
module attributes {stable_mosaic.version = 11 : i64} {
  func.func @_mm_kernel(%arg0: i32, %arg1: memref<512x27xf32, #tpu.memory_space<vmem>>, %arg2: memref<27x8xbf16, #tpu.memory_space<vmem>>, %arg3: memref<1x8xf32, #tpu.memory_space<vmem>>, %arg4: memref<1x8xf32, #tpu.memory_space<vmem>>, %arg5: memref<512x8xf32, #tpu.memory_space<vmem>>) attributes {dimension_semantics = [#tpu.dimension_semantics<parallel>], iteration_bounds = array<i64: 4>, scalar_prefetch = 0 : i64, scratch_operands = 0 : i64, tpu.core_type = #tpu.core_type<tc>, window_params = [{transform_indices = @transform_0, window_bounds = array<i64: 512, 27>}, {pipeline_mode = #tpu.pipeline_mode<synchronous>, transform_indices = @transform_1, window_bounds = array<i64: 27, 8>}, {pipeline_mode = #tpu.pipeline_mode<synchronous>, transform_indices = @transform_2, window_bounds = array<i64: 1, 8>}, {pipeline_mode = #tpu.pipeline_mode<synchronous>, transform_indices = @transform_3, window_bounds = array<i64: 1, 8>}, {transform_indices = @transform_4, window_bounds = array<i64: 512, 8>}]} {
    %c0 = arith.constant 0 : index
    %c0_0 = arith.constant 0 : index
    %0 = vector.load %arg1[%c0, %c0_0] : memref<512x27xf32, #tpu.memory_space<vmem>>, vector<512x27xf32>
    %c0_1 = arith.constant 0 : index
    %c0_2 = arith.constant 0 : index
    %1 = vector.load %arg2[%c0_1, %c0_2] : memref<27x8xbf16, #tpu.memory_space<vmem>>, vector<27x8xbf16>
    %2 = arith.truncf %0 : vector<512x27xf32> to vector<512x27xbf16>
    %cst = arith.constant dense<0.000000e+00> : vector<512x8xf32>
    %3 = tpu.matmul %2, %1, %cst {dimension_numbers = #tpu.dot_dimension_numbers<[1], [0], [0], [1], [0, 0, 1, 1], [], []>} : vector<512x27xbf16>, vector<27x8xbf16>, vector<512x8xf32> -> vector<512x8xf32>
    %c0_3 = arith.constant 0 : index
    %c0_4 = arith.constant 0 : index
    %4 = vector.load %arg3[%c0_3, %c0_4] : memref<1x8xf32, #tpu.memory_space<vmem>>, vector<1x8xf32>
    %5 = vector.broadcast %4 : vector<1x8xf32> to vector<512x8xf32>
    %6 = arith.mulf %3, %5 : vector<512x8xf32>
    %c0_5 = arith.constant 0 : index
    %c0_6 = arith.constant 0 : index
    %7 = vector.load %arg4[%c0_5, %c0_6] : memref<1x8xf32, #tpu.memory_space<vmem>>, vector<1x8xf32>
    %8 = vector.broadcast %7 : vector<1x8xf32> to vector<512x8xf32>
    %9 = arith.addf %6, %8 : vector<512x8xf32>
    %cst_7 = arith.constant 3.000000e+00 : f32
    %10 = vector.broadcast %cst_7 : f32 to vector<512x8xf32>
    %11 = arith.addf %9, %10 : vector<512x8xf32>
    %cst_8 = arith.constant 0.000000e+00 : f32
    %cst_9 = arith.constant 6.000000e+00 : f32
    %12 = vector.broadcast %cst_8 : f32 to vector<512x8xf32>
    %13 = arith.maximumf %12, %11 : vector<512x8xf32>
    %14 = vector.broadcast %cst_9 : f32 to vector<512x8xf32>
    %15 = arith.minimumf %14, %13 : vector<512x8xf32>
    %16 = arith.mulf %9, %15 : vector<512x8xf32>
    %cst_10 = arith.constant 0.166666672 : f32
    %17 = vector.broadcast %cst_10 : f32 to vector<512x8xf32>
    %18 = arith.mulf %16, %17 : vector<512x8xf32>
    %c0_11 = arith.constant 0 : index
    %c0_12 = arith.constant 0 : index
    %19 = vector.load %arg5[%c0_11, %c0_12] : memref<512x8xf32, #tpu.memory_space<vmem>>, vector<512x8xf32>
    tpu.vector_store %arg5[%c0_11, %c0_12], %18 {strides = array<i32>} : memref<512x8xf32, #tpu.memory_space<vmem>>, vector<512x8xf32>,
    return
  }
  func.func @transform_0(%arg0: i32) -> (i32, i32) {
    %c0_i32 = arith.constant 0 : i32
    %c0_i32_0 = arith.constant 0 : i32
    return %arg0, %c0_i32 : i32, i32
  }
  func.func @transform_1(%arg0: i32) -> (i32, i32) {
    %c0_i32 = arith.constant 0 : i32
    %c0_i32_0 = arith.constant 0 : i32
    %c0_i32_1 = arith.constant 0 : i32
    return %c0_i32, %c0_i32_0 : i32, i32
  }
  func.func @transform_2(%arg0: i32) -> (i32, i32) {
    %c0_i32 = arith.constant 0 : i32
    %c0_i32_0 = arith.constant 0 : i32
    %c0_i32_1 = arith.constant 0 : i32
    return %c0_i32, %c0_i32_0 : i32, i32
  }
  func.func @transform_3(%arg0: i32) -> (i32, i32) {
    %c0_i32 = arith.constant 0 : i32
    %c0_i32_0 = arith.constant 0 : i32
    %c0_i32_1 = arith.constant 0 : i32
    return %c0_i32, %c0_i32_0 : i32, i32
  }
  func.func @transform_4(%arg0: i32) -> (i32, i32) {
    %c0_i32 = arith.constant 0 : i32
    %c0_i32_0 = arith.constant 0 : i32
    return %arg0, %c0_i32 : i32, i32
  }
}

</mosaic_0001>

<bundles_post_ra>
// kernel: matmul_bn_act.1
= control target key start
LH: loop header
LB: loop body
LE: loop exit
PB: predicated region body
PF: predicated region fallthrough
CT: control target
= control target key end

     0   :  { %s1489_s15 = smov 0   ;;  %s1929_s0 = inlined_call_operand.vmem [shape: f32[2048,27], index: 0, kind: input, shape index: {}]   ;;  %s1930_s1 = inlined_call_operand.vmem [shape: bf16[27,8], index: 1, kind: input, shape index: {}]   ;;  %s1931_s2 = inlined_call_operand.vmem [shape: f32[1,8], index: 2, kind: input, shape index: {}]   ;;  %s1932_s3 = inlined_call_operand.vmem [shape: f32[1,8], index: 3, kind: input, shape index: {}]   ;;  %s1933_s4 = inlined_call_operand.vmem [shape: f32[2048,8], index: 4, kind: output, shape index: {}]  }
   0x1 LB: > { %s1289_s16 = sadd.s32 4294967295, %s1461_s15   ;;  %p1293_p0 = scmp.ge.s32.totalorder %s1461_s15, 1  ;;  %s1461_s15 = sphi %s1489_s15, %s14_s15  }
   0x2   : > { %p163_p1 = scmp.lt.s32.totalorder %s1461_s15, 5 }
   0x4   : > { %p164_p2 = pnand %p1293_p0, %p163_p1 }
   0x5   : > { %s1294_s19 = sshll.u32 (!%p164_p2), %s1289_s16, 6 }
   0x6   : > { %167 = sbr.rel (%p164_p2) target bundleno = 338 (0x152), region = 36  ;;  %p190_p3 = scmp.lt.s32.totalorder (!%p164_p2), %s1294_s19, 255 }
   0xb   : > { %v1451_v0 = vld [vmem:[%s1930_s1 + $0x8] sm:$0x3f]   ;;  %vm410_vm0 = vcmask 1044480   ;;  %vm411_vm1 = vcmask 1045504   ;;  %v1463_v1 = vmov 65535   ;;  %v1452_v5 = vld [vmem:[%s1930_s1] sm:$0xff]  }
   0xc   : > { %v412_v2 = vsel %vm410_vm0, 4294967295, %v1463_v1  ;;  %s1935_s19 = smov (!%p190_p3, %s1294_s19), 255  ;;  %vm313_vm2 = vcmask 220160   ;;  %vm1168_vm3 = vcmask 64512  }
   0xd   : > { %v413_v3 = vsel %vm411_vm1, %v412_v2, 0  ;;  %s1295_s22 = sshll.u32 %s1935_s19, 3 }
   0xe   : > { %v415_v4 = vand.u32 %v1451_v0, %v413_v3  ;;  %s1511_s25 = scalar_lea.vmem %s1929_s0, %s1295_s22  ;;  %s1640_s6 = scalar_lea.vmem %s1933_s4, %s1295_s22 }
   0xf   : > { %v202_v6 = vld [vmem:[%s1511_s25] sm:$0xff]  ;;  %v203_v7 = vld [vmem:[%s1511_s25 + $0x8] sm:$0xff]  ;;  %v204_v11 = vld [vmem:[%s1511_s25 + $0x10] sm:$0xff] }
  0x10   : > { %1370 = vmatprep.subr.bf16.mxu0 %v415_v4  ;;  %1438 = vmatprep.subr.bf16.mxu1 %v415_v4  ;;  %v234_v8 = vld [vmem:[%s1511_s25 + $0x100] sm:$0xff]  ;;  %v270_v9 = vpack.c.bf16 %v203_v7, %v202_v6  ;;  %v235_v10 = vld [vmem:[%s1511_s25 + $0x108] sm:$0xff]  ;;  %v205_v12 = vld [vmem:[%s1511_s25 + $0x18] sm:$0xff] }
  0x11   : > { %1371 = vmatpush3.bf16.msra.mxu0 %v415_v4  ;;  %1440 = vmatpush3.bf16.msra.mxu1 %v415_v4  ;;  %v286_v13 = vpack.c.bf16 %v235_v10, %v234_v8  ;;  %v271_v14 = vpack.c.bf16 %v205_v12, %v204_v11  ;;  %v236_v15 = vld [vmem:[%s1511_s25 + $0x110] sm:$0xff]  ;;  %v237_v16 = vld [vmem:[%s1511_s25 + $0x118] sm:$0xff]  ;;  %v206_v17 = vld [vmem:[%s1511_s25 + $0x20] sm:$0xff] }
  0x12   : > { %1372 = vmatprep.subr.bf16.mxu0 %v1452_v5  ;;  %1439 = vmatprep.subr.bf16.mxu1 %v1452_v5  ;;  %v287_v18 = vpack.c.bf16 %v237_v16, %v236_v15  ;;  %v207_v19 = vld [vmem:[%s1511_s25 + $0x28] sm:$0xff]  ;;  %v238_v20 = vld [vmem:[%s1511_s25 + $0x120] sm:$0xff]  ;;  %v208_v24 = vld [vmem:[%s1511_s25 + $0x30] sm:$0xff] }
  0x13   : > { %1374 = vmatprep.mubr.msk.bf16.mxu0 %vm313_vm2, %v270_v9  ;;  %v239_v21 = vld [vmem:[%s1511_s25 + $0x128] sm:$0xff]  ;;  %1406 = vmatprep.mubr.msk.bf16.mxu1 %vm313_vm2, %v286_v13  ;;  %v272_v22 = vpack.c.bf16 %v207_v19, %v206_v17  ;;  %v209_v25 = vld [vmem:[%s1511_s25 + $0x38] sm:$0xff]  ;;  %v240_v26 = vld [vmem:[%s1511_s25 + $0x130] sm:$0xff] }
  0x14   : > { %v288_v23 = vpack.c.bf16 %v239_v21, %v238_v20  ;;  %v241_v27 = vld [vmem:[%s1511_s25 + $0x138] sm:$0xff]  ;;  %v210_v28 = vld [vmem:[%s1511_s25 + $0x40] sm:$0xff]  ;;  %v211_v29 = vld [vmem:[%s1511_s25 + $0x48] sm:$0xff]  ;;  %v273_v32 = vpack.c.bf16 %v209_v25, %v208_v24 }
  0x15   : > { %1373 = vmatpush3.bf16.msra.mxu0 %v1452_v5  ;;  %1441 = vmatpush3.bf16.msra.mxu1 %v1452_v5  ;;  %v242_v30 = vld [vmem:[%s1511_s25 + $0x140] sm:$0xff]  ;;  %v243_v31 = vld [vmem:[%s1511_s25 + $0x148] sm:$0xff]  ;;  %v289_v33 = vpack.c.bf16 %v241_v27, %v240_v26  ;;  %v274_v34 = vpack.c.bf16 %v211_v29, %v210_v28  ;;  %v212_v36 = vld [vmem:[%s1511_s25 + $0x50] sm:$0xff] }
  0x16   : > { %v290_v35 = vpack.c.bf16 %v243_v31, %v242_v30  ;;  %v213_v37 = vld [vmem:[%s1511_s25 + $0x58] sm:$0xff]  ;;  %v244_v38 = vld [vmem:[%s1511_s25 + $0x150] sm:$0xff]  ;;  %v214_v40 = vld [vmem:[%s1511_s25 + $0x60] sm:$0xff] }
  0x17   : > { %v245_v39 = vld [vmem:[%s1511_s25 + $0x158] sm:$0xff]  ;;  %v215_v41 = vld [vmem:[%s1511_s25 + $0x68] sm:$0xff]  ;;  %v246_v42 = vld [vmem:[%s1511_s25 + $0x160] sm:$0xff]  ;;  %v275_v44 = vpack.c.bf16 %v213_v37, %v212_v36 }
  0x18   : > { %1375 = vmatmul.mubr.msk.bf16.vlgmr.msra.gmra.mxu0 %vm313_vm2, %v271_v14  ;;  %1407 = vmatmul.mubr.msk.bf16.vlgmr.msra.gmra.mxu1 %vm313_vm2, %v287_v18  ;;  %v247_v43 = vld [vmem:[%s1511_s25 + $0x168] sm:$0xff]  ;;  %v291_v45 = vpack.c.bf16 %v245_v39, %v244_v38  ;;  %v276_v46 = vpack.c.bf16 %v215_v41, %v214_v40  ;;  %v216_v48 = vld [vmem:[%s1511_s25 + $0x70] sm:$0xff]  ;;  %v217_v49 = vld [vmem:[%s1511_s25 + $0x78] sm:$0xff] }
  0x19   : > { %1378 = vmatprep.mubr.msk.bf16.mxu0 %vm313_vm2, %v272_v22  ;;  %1410 = vmatprep.mubr.msk.bf16.mxu1 %vm313_vm2, %v288_v23  ;;  %v292_v47 = vpack.c.bf16 %v247_v43, %v246_v42  ;;  %v248_v50 = vld [vmem:[%s1511_s25 + $0x170] sm:$0xff]  ;;  %v249_v51 = vld [vmem:[%s1511_s25 + $0x178] sm:$0xff]  ;;  %v218_v52 = vld [vmem:[%s1511_s25 + $0x80] sm:$0xff]  ;;  %v277_v56 = vpack.c.bf16 %v217_v49, %v216_v48 }
  0x1a   : > { %v219_v53 = vld [vmem:[%s1511_s25 + $0x88] sm:$0xff]  ;;  %v250_v54 = vld [vmem:[%s1511_s25 + $0x180] sm:$0xff]  ;;  %v293_v57 = vpack.c.bf16 %v249_v51, %v248_v50  ;;  %v220_v60 = vld [vmem:[%s1511_s25 + $0x90] sm:$0xff] }
  0x1b   : > { %v251_v55 = vld [vmem:[%s1511_s25 + $0x188] sm:$0xff]  ;;  %v278_v58 = vpack.c.bf16 %v219_v53, %v218_v52  ;;  %v221_v61 = vld [vmem:[%s1511_s25 + $0x98] sm:$0xff]  ;;  %v252_v62 = vld [vmem:[%s1511_s25 + $0x190] sm:$0xff] }
  0x1c   : > { %v294_v59 = vpack.c.bf16 %v251_v55, %v250_v54  ;;  %v253_v63 = vld [vmem:[%s1511_s25 + $0x198] sm:$0xff]  ;;  %v222_v0 = vld [vmem:[%s1511_s25 + $0xa0] sm:$0xff]  ;;  %v223_v1 = vld [vmem:[%s1511_s25 + $0xa8] sm:$0xff]  ;;  %v279_v4 = vpack.c.bf16 %v221_v61, %v220_v60 }
  0x1d   : > { %v254_v2 = vld [vmem:[%s1511_s25 + $0x1a0] sm:$0xff]  ;;  %v255_v3 = vld [vmem:[%s1511_s25 + $0x1a8] sm:$0xff]  ;;  %v295_v5 = vpack.c.bf16 %v253_v63, %v252_v62  ;;  %v280_v6 = vpack.c.bf16 %v223_v1, %v222_v0  ;;  %v224_v8 = vld [vmem:[%s1511_s25 + $0xb0] sm:$0xff] }
  0x1e   : > { %v296_v7 = vpack.c.bf16 %v255_v3, %v254_v2  ;;  %v225_v9 = vld [vmem:[%s1511_s25 + $0xb8] sm:$0xff]  ;;  %v256_v10 = vld [vmem:[%s1511_s25 + $0x1b0] sm:$0xff]  ;;  %v226_v12 = vld [vmem:[%s1511_s25 + $0xc0] sm:$0xff] }
  0x1f   : > { %v257_v11 = vld [vmem:[%s1511_s25 + $0x1b8] sm:$0xff]  ;;  %v227_v13 = vld [vmem:[%s1511_s25 + $0xc8] sm:$0xff]  ;;  %v258_v14 = vld [vmem:[%s1511_s25 + $0x1c0] sm:$0xff]  ;;  %v281_v16 = vpack.c.bf16 %v225_v9, %v224_v8 }
  0x20   : > { %1379 = vmatmul.mubr.msk.bf16.gmra.mxu0 %vm313_vm2, %v273_v32  ;;  %1411 = vmatmul.mubr.msk.bf16.gmra.mxu1 %vm313_vm2, %v289_v33  ;;  %v259_v15 = vld [vmem:[%s1511_s25 + $0x1c8] sm:$0xff]  ;;  %v297_v17 = vpack.c.bf16 %v257_v11, %v256_v10  ;;  %v282_v18 = vpack.c.bf16 %v227_v13, %v226_v12  ;;  %v228_v20 = vld [vmem:[%s1511_s25 + $0xd0] sm:$0xff]  ;;  %v229_v21 = vld [vmem:[%s1511_s25 + $0xd8] sm:$0xff] }
  0x21   : > { %1382 = vmatprep.mubr.msk.bf16.mxu0 %vm313_vm2, %v274_v34  ;;  %1414 = vmatprep.mubr.msk.bf16.mxu1 %vm313_vm2, %v290_v35  ;;  %v298_v19 = vpack.c.bf16 %v259_v15, %v258_v14  ;;  %v260_v22 = vld [vmem:[%s1511_s25 + $0x1d0] sm:$0xff]  ;;  %v261_v23 = vld [vmem:[%s1511_s25 + $0x1d8] sm:$0xff]  ;;  %v230_v24 = vld [vmem:[%s1511_s25 + $0xe0] sm:$0xff]  ;;  %v283_v28 = vpack.c.bf16 %v229_v21, %v228_v20 }
  0x22   : > { %v231_v25 = vld [vmem:[%s1511_s25 + $0xe8] sm:$0xff]  ;;  %v262_v26 = vld [vmem:[%s1511_s25 + $0x1e0] sm:$0xff]  ;;  %v299_v29 = vpack.c.bf16 %v261_v23, %v260_v22  ;;  %v232_v32 = vld [vmem:[%s1511_s25 + $0xf0] sm:$0xff] }
  0x23   : > { %v263_v27 = vld [vmem:[%s1511_s25 + $0x1e8] sm:$0xff]  ;;  %v284_v30 = vpack.c.bf16 %v231_v25, %v230_v24  ;;  %v233_v33 = vld [vmem:[%s1511_s25 + $0xf8] sm:$0xff]  ;;  %v264_v34 = vld [vmem:[%s1511_s25 + $0x1f0] sm:$0xff] }
  0x24   : > { %v300_v31 = vpack.c.bf16 %v263_v27, %v262_v26  ;;  %v265_v35 = vld [vmem:[%s1511_s25 + $0x1f8] sm:$0xff]  ;;  %v285_v36 = vpack.c.bf16 %v233_v33, %v232_v32  ;;  %v1612_v38 = vld [vmem:[%s1931_s2] ss:$0 sm:$0xff] }
  0x25   : > { %v301_v37 = vpack.c.bf16 %v265_v35, %v264_v34  ;;  %v1617_v40 = vld [vmem:[%s1932_s3] ss:$0 sm:$0xff] }
  0x28   : > { %1383 = vmatmul.mubr.msk.bf16.gmra.mxu0 %vm313_vm2, %v275_v44  ;;  %1415 = vmatmul.mubr.msk.bf16.gmra.mxu1 %vm313_vm2, %v291_v45 }
  0x29   : > { %1386 = vmatprep.mubr.msk.bf16.mxu0 %vm313_vm2, %v276_v46  ;;  %1418 = vmatprep.mubr.msk.bf16.mxu1 %vm313_vm2, %v292_v47 }
  0x30   : > { %1387 = vmatmul.mubr.msk.bf16.gmra.mxu0 %vm313_vm2, %v277_v56  ;;  %1419 = vmatmul.mubr.msk.bf16.gmra.mxu1 %vm313_vm2, %v293_v57 }
  0x31   : > { %1390 = vmatprep.mubr.msk.bf16.mxu0 %vm313_vm2, %v278_v58  ;;  %1422 = vmatprep.mubr.msk.bf16.mxu1 %vm313_vm2, %v294_v59 }
  0x38   : > { %1391 = vmatmul.mubr.msk.bf16.gmra.mxu0 %vm313_vm2, %v279_v4  ;;  %1423 = vmatmul.mubr.msk.bf16.gmra.mxu1 %vm313_vm2, %v295_v5 }
  0x39   : > { %1394 = vmatprep.mubr.msk.bf16.mxu0 %vm313_vm2, %v280_v6  ;;  %1426 = vmatprep.mubr.msk.bf16.mxu1 %vm313_vm2, %v296_v7 }
  0x40   : > { %1395 = vmatmul.mubr.msk.bf16.gmra.mxu0 %vm313_vm2, %v281_v16  ;;  %1427 = vmatmul.mubr.msk.bf16.gmra.mxu1 %vm313_vm2, %v297_v17 }
  0x41   : > { %1398 = vmatprep.mubr.msk.bf16.mxu0 %vm313_vm2, %v282_v18  ;;  %1430 = vmatprep.mubr.msk.bf16.mxu1 %vm313_vm2, %v298_v19 }
  0x48   : > { %1399 = vmatmul.mubr.msk.bf16.gmra.mxu0 %vm313_vm2, %v283_v28  ;;  %1431 = vmatmul.mubr.msk.bf16.gmra.mxu1 %vm313_vm2, %v299_v29 }
  0x49   : > { %1402 = vmatprep.mubr.msk.bf16.mxu0 %vm313_vm2, %v284_v30  ;;  %1434 = vmatprep.mubr.msk.bf16.mxu1 %vm313_vm2, %v300_v31 }
  0x50   : > { %1403 = vmatmul.mubr.msk.bf16.gmra.mxu0 %vm313_vm2, %v285_v36  ;;  %1435 = vmatmul.mubr.msk.bf16.gmra.mxu1 %vm313_vm2, %v301_v37 }
  0xd8   : > { %v1376_v39 = vpop.f32.mrf.mxu0  ;;  %v1408_v41 = vpop.f32.mrf.mxu1 }
  0xd9   : > { %v715_v42 = vmul.f32 %v1376_v39, %v1612_v38  ;;  %v747_v43 = vmul.f32 %v1408_v41, %v1612_v38 }
  0xda   : > { %v451_v44 = vpop.f32.mrf.mxu0  ;;  %v579_v45 = vpop.f32.mrf.mxu1 }
  0xdb   : > { %v786_v46 = vadd.f32 %v1617_v40, %v715_v42  ;;  %v818_v47 = vadd.f32 %v1617_v40, %v747_v43  ;;  %v713_v48 = vmul.f32 %v1612_v38, %v451_v44  ;;  %v745_v49 = vmul.f32 %v1612_v38, %v579_v45 }
  0xdc   : > { %v1377_v50 = vpop.f32.mrf.mxu0  ;;  %v1409_v51 = vpop.f32.mrf.mxu1 }
  0xdd   : > { %v850_v52 = vadd.f32 3.0, %v786_v46  ;;  %v882_v53 = vadd.f32 3.0, %v818_v47  ;;  %v784_v54 = vadd.f32 %v1617_v40, %v713_v48  ;;  %v816_v55 = vadd.f32 %v1617_v40, %v745_v49 }
  0xde   : > { %v716_v56 = vmul.f32 %v1377_v50, %v1612_v38  ;;  %v748_v57 = vmul.f32 %v1409_v51, %v1612_v38  ;;  %v454_v58 = vpop.f32.mrf.mxu0  ;;  %v582_v59 = vpop.f32.mrf.mxu1 }
  0xdf   : > { %v914_v60 = vmax.f32 %v850_v52, 0.0  ;;  %v946_v61 = vmax.f32 %v882_v53, 0.0  ;;  %v848_v62 = vadd.f32 3.0, %v784_v54  ;;  %v880_v63 = vadd.f32 3.0, %v816_v55 }
  0xe0   : > { %v787_v0 = vadd.f32 %v1617_v40, %v716_v56  ;;  %v819_v1 = vadd.f32 %v1617_v40, %v748_v57  ;;  %v714_v2 = vmul.f32 %v1612_v38, %v454_v58  ;;  %v746_v3 = vmul.f32 %v1612_v38, %v582_v59  ;;  %v1380_v4 = vpop.f32.mrf.mxu0  ;;  %v1412_v5 = vpop.f32.mrf.mxu1 }
  0xe1   : > { %v978_v6 = vmin.f32 %v914_v60, 6.0  ;;  %v1010_v7 = vmin.f32 %v946_v61, 6.0  ;;  %v912_v8 = vmax.f32 %v848_v62, 0.0  ;;  %v944_v9 = vmax.f32 %v880_v63, 0.0 }
  0xe2   : > { %v851_v10 = vadd.f32 3.0, %v787_v0  ;;  %v883_v11 = vadd.f32 3.0, %v819_v1  ;;  %v785_v12 = vadd.f32 %v1617_v40, %v714_v2  ;;  %v817_v13 = vadd.f32 %v1617_v40, %v746_v3  ;;  %v467_v14 = vpop.f32.mrf.mxu0  ;;  %v595_v15 = vpop.f32.mrf.mxu1 }
  0xe3   : > { %v1042_v16 = vmul.f32 %v978_v6, %v786_v46  ;;  %v1074_v17 = vmul.f32 %v1010_v7, %v818_v47  ;;  %v976_v18 = vmin.f32 %v912_v8, 6.0  ;;  %v1008_v19 = vmin.f32 %v944_v9, 6.0 }
  0xe4   : > { %v915_v20 = vmax.f32 %v851_v10, 0.0  ;;  %v947_v21 = vmax.f32 %v883_v11, 0.0  ;;  %v849_v22 = vadd.f32 3.0, %v785_v12  ;;  %v881_v23 = vadd.f32 3.0, %v817_v13  ;;  %v1381_v24 = vpop.f32.mrf.mxu0  ;;  %v1413_v25 = vpop.f32.mrf.mxu1 }
  0xe5   : > { %v1106_v26 = vmul.f32 0.16666667, %v1042_v16  ;;  %v1138_v27 = vmul.f32 0.16666667, %v1074_v17  ;;  %v1040_v28 = vmul.f32 %v976_v18, %v784_v54  ;;  %v1072_v29 = vmul.f32 %v1008_v19, %v816_v55 }
  0xe6   : > { %v979_v30 = vmin.f32 %v915_v20, 6.0  ;;  %v1011_v31 = vmin.f32 %v947_v21, 6.0  ;;  %v913_v32 = vmax.f32 %v849_v22, 0.0  ;;  %v945_v33 = vmax.f32 %v881_v23, 0.0  ;;  %v470_v34 = vpop.f32.mrf.mxu0  ;;  %v598_v35 = vpop.f32.mrf.mxu1 }
  0xe7   : > { %1171 = vst.msk [vmem:[%s1640_s6 + $0x10] sm:$0xff] %vm1168_vm3, %v1106_v26  ;;  %1203 = vst.msk [vmem:[%s1640_s6 + $0x110] sm:$0xff] %vm1168_vm3, %v1138_v27  ;;  %v1104_v36 = vmul.f32 0.16666667, %v1040_v28  ;;  %v1136_v37 = vmul.f32 0.16666667, %v1072_v29  ;;  %v719_v39 = vmul.f32 %v1380_v4, %v1612_v38  ;;  %v751_v41 = vmul.f32 %v1412_v5, %v1612_v38 }
  0xe8   : > { %v1043_v42 = vmul.f32 %v979_v30, %v787_v0  ;;  %v1075_v43 = vmul.f32 %v1011_v31, %v819_v1  ;;  %v977_v44 = vmin.f32 %v913_v32, 6.0  ;;  %v1009_v45 = vmin.f32 %v945_v33, 6.0  ;;  %v1648_v46 = vpop.f32.mrf.mxu0  ;;  %v1650_v47 = vpop.f32.mrf.mxu1 }
  0xe9   : > { %1169 = vst.msk [vmem:[%s1640_s6] sm:$0xff] %vm1168_vm3, %v1104_v36  ;;  %1201 = vst.msk [vmem:[%s1640_s6 + $0x100] sm:$0xff] %vm1168_vm3, %v1136_v37  ;;  %v790_v48 = vadd.f32 %v1617_v40, %v719_v39  ;;  %v822_v49 = vadd.f32 %v1617_v40, %v751_v41  ;;  %v717_v50 = vmul.f32 %v1612_v38, %v467_v14 }
  0xea   : > { %v749_v51 = vmul.f32 %v1612_v38, %v595_v15  ;;  %v1107_v52 = vmul.f32 0.16666667, %v1043_v42  ;;  %v1139_v53 = vmul.f32 0.16666667, %v1075_v43  ;;  %v1041_v54 = vmul.f32 %v977_v44, %v785_v12  ;;  %v1660_v56 = vpop.f32.mrf.mxu0  ;;  %v1662_v57 = vpop.f32.mrf.mxu1 }
  0xeb   : > { %v1073_v55 = vmul.f32 %v1009_v45, %v817_v13  ;;  %v854_v58 = vadd.f32 3.0, %v790_v48  ;;  %v886_v59 = vadd.f32 3.0, %v822_v49  ;;  %v788_v60 = vadd.f32 %v1617_v40, %v717_v50 }
  0xec   : > { %v820_v61 = vadd.f32 %v1617_v40, %v749_v51  ;;  %1172 = vst.msk [vmem:[%s1640_s6 + $0x18] sm:$0xff] %vm1168_vm3, %v1107_v52  ;;  %1204 = vst.msk [vmem:[%s1640_s6 + $0x118] sm:$0xff] %vm1168_vm3, %v1139_v53  ;;  %v1105_v62 = vmul.f32 0.16666667, %v1041_v54  ;;  %v720_v0 = vmul.f32 %v1381_v24, %v1612_v38  ;;  %v752_v1 = vmul.f32 %v1413_v25, %v1612_v38  ;;  %v1672_v2 = vpop.f32.mrf.mxu0  ;;  %v1674_v3 = vpop.f32.mrf.mxu1 }
  0xed   : > { %v1137_v63 = vmul.f32 0.16666667, %v1073_v55  ;;  %v918_v4 = vmax.f32 %v854_v58, 0.0  ;;  %v950_v5 = vmax.f32 %v886_v59, 0.0  ;;  %v852_v6 = vadd.f32 3.0, %v788_v60 }
  0xee   : > { %v884_v7 = vadd.f32 3.0, %v820_v61  ;;  %1170 = vst.msk [vmem:[%s1640_s6 + $0x8] sm:$0xff] %vm1168_vm3, %v1105_v62  ;;  %v791_v8 = vadd.f32 %v1617_v40, %v720_v0  ;;  %v823_v9 = vadd.f32 %v1617_v40, %v752_v1  ;;  %v718_v10 = vmul.f32 %v1612_v38, %v470_v34  ;;  %v1684_v16 = vpop.f32.mrf.mxu0  ;;  %v1686_v17 = vpop.f32.mrf.mxu1 }
  0xef   : > { %1202 = vst.msk [vmem:[%s1640_s6 + $0x108] sm:$0xff] %vm1168_vm3, %v1137_v63  ;;  %v750_v11 = vmul.f32 %v1612_v38, %v598_v35  ;;  %v982_v12 = vmin.f32 %v918_v4, 6.0  ;;  %v1014_v13 = vmin.f32 %v950_v5, 6.0  ;;  %v916_v14 = vmax.f32 %v852_v6, 0.0 }
  0xf0   : > { %v948_v15 = vmax.f32 %v884_v7, 0.0  ;;  %v855_v18 = vadd.f32 3.0, %v791_v8  ;;  %v887_v19 = vadd.f32 3.0, %v823_v9  ;;  %v789_v20 = vadd.f32 %v1617_v40, %v718_v10  ;;  %v1690_v34 = vpop.f32.mrf.mxu0  ;;  %v1692_v35 = vpop.f32.mrf.mxu1 }
  0xf1   : > { %v821_v21 = vadd.f32 %v1617_v40, %v750_v11  ;;  %v1046_v22 = vmul.f32 %v982_v12, %v790_v48  ;;  %v1078_v23 = vmul.f32 %v1014_v13, %v822_v49  ;;  %v980_v24 = vmin.f32 %v916_v14, 6.0 }
  0xf2   : > { %v1012_v25 = vmin.f32 %v948_v15, 6.0  ;;  %v919_v26 = vmax.f32 %v855_v18, 0.0  ;;  %v951_v27 = vmax.f32 %v887_v19, 0.0  ;;  %v853_v28 = vadd.f32 3.0, %v789_v20  ;;  %v1712_v54 = vpop.f32.mrf.mxu0  ;;  %v1714_v55 = vpop.f32.mrf.mxu1 }
  0xf3   : > { %v885_v29 = vadd.f32 3.0, %v821_v21  ;;  %v1110_v30 = vmul.f32 0.16666667, %v1046_v22  ;;  %v1142_v31 = vmul.f32 0.16666667, %v1078_v23  ;;  %v1044_v32 = vmul.f32 %v980_v24, %v788_v60 }
  0xf4   : > { %v1076_v33 = vmul.f32 %v1012_v25, %v820_v61  ;;  %v983_v36 = vmin.f32 %v919_v26, 6.0  ;;  %v1015_v37 = vmin.f32 %v951_v27, 6.0  ;;  %v917_v39 = vmax.f32 %v853_v28, 0.0  ;;  %v1726_v10 = vpop.f32.mrf.mxu0  ;;  %v1728_v11 = vpop.f32.mrf.mxu1 }
  0xf5   : > { %v949_v41 = vmax.f32 %v885_v29, 0.0  ;;  %1175 = vst.msk [vmem:[%s1640_s6 + $0x30] sm:$0xff] %vm1168_vm3, %v1110_v30  ;;  %1207 = vst.msk [vmem:[%s1640_s6 + $0x130] sm:$0xff] %vm1168_vm3, %v1142_v31  ;;  %v1108_v42 = vmul.f32 0.16666667, %v1044_v32  ;;  %v723_v44 = vmul.f32 %v1648_v46, %v1612_v38  ;;  %v755_v45 = vmul.f32 %v1650_v47, %v1612_v38 }
  0xf6   : > { %v1140_v43 = vmul.f32 0.16666667, %v1076_v33  ;;  %v1047_v48 = vmul.f32 %v983_v36, %v791_v8  ;;  %v1079_v49 = vmul.f32 %v1015_v37, %v823_v9  ;;  %v981_v50 = vmin.f32 %v917_v39, 6.0  ;;  %v630_v28 = vpop.f32.mrf.mxu1 }
  0xf7   : > { %v1013_v51 = vmin.f32 %v949_v41, 6.0  ;;  %1173 = vst.msk [vmem:[%s1640_s6 + $0x20] sm:$0xff] %vm1168_vm3, %v1108_v42  ;;  %v794_v52 = vadd.f32 %v1617_v40, %v723_v44  ;;  %v826_v53 = vadd.f32 %v1617_v40, %v755_v45  ;;  %v721_v46 = vmul.f32 %v1612_v38, %v1660_v56 }
  0xf8   : > { %1205 = vst.msk [vmem:[%s1640_s6 + $0x120] sm:$0xff] %vm1168_vm3, %v1140_v43  ;;  %v753_v47 = vmul.f32 %v1612_v38, %v1662_v57  ;;  %v1111_v58 = vmul.f32 0.16666667, %v1047_v48  ;;  %v1143_v59 = vmul.f32 0.16666667, %v1079_v49  ;;  %v1045_v60 = vmul.f32 %v981_v50, %v789_v20 }
  0xf9   : > { %v1077_v61 = vmul.f32 %v1013_v51, %v821_v21  ;;  %v858_v62 = vadd.f32 3.0, %v794_v52  ;;  %v890_v63 = vadd.f32 3.0, %v826_v53  ;;  %v792_v0 = vadd.f32 %v1617_v40, %v721_v46  ;;  %v1752_v51 = vpop.f32.mrf.mxu1 }
  0xfa   : > { %v824_v1 = vadd.f32 %v1617_v40, %v753_v47  ;;  %1176 = vst.msk [vmem:[%s1640_s6 + $0x38] sm:$0xff] %vm1168_vm3, %v1111_v58  ;;  %1208 = vst.msk [vmem:[%s1640_s6 + $0x138] sm:$0xff] %vm1168_vm3, %v1143_v59  ;;  %v1109_v56 = vmul.f32 0.16666667, %v1045_v60  ;;  %v724_v4 = vmul.f32 %v1672_v2, %v1612_v38  ;;  %v756_v5 = vmul.f32 %v1674_v3, %v1612_v38 }
  0xfb   : > { %v1141_v57 = vmul.f32 0.16666667, %v1077_v61  ;;  %v922_v6 = vmax.f32 %v858_v62, 0.0  ;;  %v954_v7 = vmax.f32 %v890_v63, 0.0  ;;  %v856_v8 = vadd.f32 3.0, %v792_v0 }
  0xfc   : > { %v888_v9 = vadd.f32 3.0, %v824_v1  ;;  %1174 = vst.msk [vmem:[%s1640_s6 + $0x28] sm:$0xff] %vm1168_vm3, %v1109_v56  ;;  %v795_v12 = vadd.f32 %v1617_v40, %v724_v4  ;;  %v827_v13 = vadd.f32 %v1617_v40, %v756_v5  ;;  %v722_v2 = vmul.f32 %v1612_v38, %v1684_v16  ;;  %v502_v16 = vpop.f32.mrf.mxu0  ;;  %v643_v5 = vpop.f32.mrf.mxu1 }
  0xfd   : > { %1206 = vst.msk [vmem:[%s1640_s6 + $0x128] sm:$0xff] %vm1168_vm3, %v1141_v57  ;;  %v754_v3 = vmul.f32 %v1612_v38, %v1686_v17  ;;  %v986_v14 = vmin.f32 %v922_v6, 6.0  ;;  %v1018_v15 = vmin.f32 %v954_v7, 6.0  ;;  %v920_v18 = vmax.f32 %v856_v8, 0.0 }
  0xfe   : > { %v952_v19 = vmax.f32 %v888_v9, 0.0  ;;  %v859_v20 = vadd.f32 3.0, %v795_v12  ;;  %v891_v21 = vadd.f32 3.0, %v827_v13  ;;  %v793_v22 = vadd.f32 %v1617_v40, %v722_v2  ;;  %v1750_v50 = vpop.f32.mrf.mxu0 }
  0xff   : > { %v825_v23 = vadd.f32 %v1617_v40, %v754_v3  ;;  %v1050_v24 = vmul.f32 %v986_v14, %v794_v52  ;;  %v1082_v25 = vmul.f32 %v1018_v15, %v826_v53  ;;  %v984_v26 = vmin.f32 %v920_v18, 6.0 }
 0x100   : > { %v1016_v27 = vmin.f32 %v952_v19, 6.0  ;;  %v923_v29 = vmax.f32 %v859_v20, 0.0  ;;  %v955_v17 = vmax.f32 %v891_v21, 0.0  ;;  %v857_v30 = vadd.f32 3.0, %v793_v22  ;;  %v515_v4 = vpop.f32.mrf.mxu0  ;;  %v1425_v21 = vpop.f32.mrf.mxu1 }
 0x101   : > { %v889_v31 = vadd.f32 3.0, %v825_v23  ;;  %v1114_v32 = vmul.f32 0.16666667, %v1050_v24  ;;  %v1146_v33 = vmul.f32 0.16666667, %v1082_v25  ;;  %v1048_v36 = vmul.f32 %v984_v26, %v792_v0 }
 0x102   : > { %v1080_v37 = vmul.f32 %v1016_v27, %v824_v1  ;;  %v987_v39 = vmin.f32 %v923_v29, 6.0  ;;  %v1019_v41 = vmin.f32 %v955_v17, 6.0  ;;  %v921_v42 = vmax.f32 %v857_v30, 0.0  ;;  %v1393_v20 = vpop.f32.mrf.mxu0 }
 0x103   : > { %v953_v43 = vmax.f32 %v889_v31, 0.0  ;;  %1179 = vst.msk [vmem:[%s1640_s6 + $0x50] sm:$0xff] %vm1168_vm3, %v1114_v32  ;;  %1211 = vst.msk [vmem:[%s1640_s6 + $0x150] sm:$0xff] %vm1168_vm3, %v1146_v33  ;;  %v1112_v44 = vmul.f32 0.16666667, %v1048_v36  ;;  %v727_v48 = vmul.f32 %v1690_v34, %v1612_v38  ;;  %v759_v49 = vmul.f32 %v1692_v35, %v1612_v38 }
 0x104   : > { %v1144_v45 = vmul.f32 0.16666667, %v1080_v37  ;;  %v1051_v52 = vmul.f32 %v987_v39, %v795_v12  ;;  %v1083_v53 = vmul.f32 %v1019_v41, %v827_v13  ;;  %v985_v46 = vmin.f32 %v921_v42, 6.0  ;;  %v518_v39 = vpop.f32.mrf.mxu0  ;;  %v646_v41 = vpop.f32.mrf.mxu1 }
 0x105   : > { %v1017_v47 = vmin.f32 %v953_v43, 6.0  ;;  %1177 = vst.msk [vmem:[%s1640_s6 + $0x40] sm:$0xff] %vm1168_vm3, %v1112_v44  ;;  %v798_v58 = vadd.f32 %v1617_v40, %v727_v48  ;;  %v830_v34 = vadd.f32 %v1617_v40, %v759_v49  ;;  %v725_v35 = vmul.f32 %v1612_v38, %v1712_v54 }
 0x106   : > { %1209 = vst.msk [vmem:[%s1640_s6 + $0x140] sm:$0xff] %vm1168_vm3, %v1144_v45  ;;  %v757_v59 = vmul.f32 %v1612_v38, %v1714_v55  ;;  %v1115_v60 = vmul.f32 0.16666667, %v1051_v52  ;;  %v1147_v61 = vmul.f32 0.16666667, %v1083_v53  ;;  %v1049_v62 = vmul.f32 %v985_v46, %v793_v22 }
 0x107   : > { %v1081_v63 = vmul.f32 %v1017_v47, %v825_v23  ;;  %v862_v0 = vadd.f32 3.0, %v798_v58  ;;  %v894_v1 = vadd.f32 3.0, %v830_v34  ;;  %v796_v56 = vadd.f32 %v1617_v40, %v725_v35 }
 0x108   : > { %v828_v57 = vadd.f32 %v1617_v40, %v757_v59  ;;  %1180 = vst.msk [vmem:[%s1640_s6 + $0x58] sm:$0xff] %vm1168_vm3, %v1115_v60  ;;  %1212 = vst.msk [vmem:[%s1640_s6 + $0x158] sm:$0xff] %vm1168_vm3, %v1147_v61  ;;  %v1113_v54 = vmul.f32 0.16666667, %v1049_v62  ;;  %v728_v6 = vmul.f32 %v1726_v10, %v1612_v38  ;;  %v760_v7 = vmul.f32 %v1728_v11, %v1612_v38  ;;  %v1396_v61 = vpop.f32.mrf.mxu0 }
 0x109   : > { %v1145_v55 = vmul.f32 0.16666667, %v1081_v63  ;;  %v926_v8 = vmax.f32 %v862_v0, 0.0  ;;  %v958_v9 = vmax.f32 %v894_v1, 0.0  ;;  %v860_v12 = vadd.f32 3.0, %v796_v56 }
 0x10a   : > { %v892_v13 = vadd.f32 3.0, %v828_v57  ;;  %1178 = vst.msk [vmem:[%s1640_s6 + $0x48] sm:$0xff] %vm1168_vm3, %v1113_v54  ;;  %v799_v2 = vadd.f32 %v1617_v40, %v728_v6  ;;  %v831_v3 = vadd.f32 %v1617_v40, %v760_v7  ;;  %v726_v14 = vmul.f32 %v1612_v38, %v502_v16 }
 0x10b   : > { %1210 = vst.msk [vmem:[%s1640_s6 + $0x148] sm:$0xff] %vm1168_vm3, %v1145_v55  ;;  %v758_v15 = vmul.f32 %v1612_v38, %v630_v28  ;;  %v990_v10 = vmin.f32 %v926_v8, 6.0  ;;  %v1022_v18 = vmin.f32 %v958_v9, 6.0  ;;  %v924_v19 = vmax.f32 %v860_v12, 0.0 }
 0x10c   : > { %v956_v11 = vmax.f32 %v892_v13, 0.0  ;;  %v863_v22 = vadd.f32 3.0, %v799_v2  ;;  %v895_v23 = vadd.f32 3.0, %v831_v3  ;;  %v797_v24 = vadd.f32 %v1617_v40, %v726_v14 }
 0x10d   : > { %v829_v25 = vadd.f32 %v1617_v40, %v758_v15  ;;  %v1054_v26 = vmul.f32 %v990_v10, %v798_v58  ;;  %v1086_v27 = vmul.f32 %v1022_v18, %v830_v34  ;;  %v988_v29 = vmin.f32 %v924_v19, 6.0 }
 0x10e   : > { %v1020_v17 = vmin.f32 %v956_v11, 6.0  ;;  %v927_v16 = vmax.f32 %v863_v22, 0.0  ;;  %v959_v28 = vmax.f32 %v895_v23, 0.0  ;;  %v861_v30 = vadd.f32 3.0, %v797_v24 }
 0x10f   : > { %v893_v31 = vadd.f32 3.0, %v829_v25  ;;  %v1118_v32 = vmul.f32 0.16666667, %v1054_v26  ;;  %v1150_v33 = vmul.f32 0.16666667, %v1086_v27  ;;  %v1052_v36 = vmul.f32 %v988_v29, %v796_v56 }
 0x110   : > { %v1084_v37 = vmul.f32 %v1020_v17, %v828_v57  ;;  %v991_v42 = vmin.f32 %v927_v16, 6.0  ;;  %v1023_v43 = vmin.f32 %v959_v28, 6.0  ;;  %v925_v44 = vmax.f32 %v861_v30, 0.0 }
 0x111   : > { %v957_v45 = vmax.f32 %v893_v31, 0.0  ;;  %1183 = vst.msk [vmem:[%s1640_s6 + $0x70] sm:$0xff] %vm1168_vm3, %v1118_v32  ;;  %1215 = vst.msk [vmem:[%s1640_s6 + $0x170] sm:$0xff] %vm1168_vm3, %v1150_v33  ;;  %v1116_v48 = vmul.f32 0.16666667, %v1052_v36  ;;  %v731_v52 = vmul.f32 %v1750_v50, %v1612_v38  ;;  %v763_v53 = vmul.f32 %v1752_v51, %v1612_v38  ;;  %v1428_v51 = vpop.f32.mrf.mxu1 }
 0x112   : > { %v1148_v49 = vmul.f32 0.16666667, %v1084_v37  ;;  %v1055_v46 = vmul.f32 %v991_v42, %v799_v2  ;;  %v1087_v47 = vmul.f32 %v1023_v43, %v831_v3  ;;  %v989_v58 = vmin.f32 %v925_v44, 6.0  ;;  %v531_v2 = vpop.f32.mrf.mxu0 }
 0x113   : > { %v1021_v34 = vmin.f32 %v957_v45, 6.0  ;;  %1181 = vst.msk [vmem:[%s1640_s6 + $0x60] sm:$0xff] %vm1168_vm3, %v1116_v48  ;;  %v802_v35 = vadd.f32 %v1617_v40, %v731_v52  ;;  %v834_v59 = vadd.f32 %v1617_v40, %v763_v53  ;;  %v729_v60 = vmul.f32 %v1612_v38, %v515_v4  ;;  %v659_v3 = vpop.f32.mrf.mxu1 }
 0x114   : > { %1213 = vst.msk [vmem:[%s1640_s6 + $0x160] sm:$0xff] %vm1168_vm3, %v1148_v49  ;;  %v761_v50 = vmul.f32 %v1612_v38, %v643_v5  ;;  %v1119_v62 = vmul.f32 0.16666667, %v1055_v46  ;;  %v1151_v63 = vmul.f32 0.16666667, %v1087_v47  ;;  %v1053_v0 = vmul.f32 %v989_v58, %v797_v24  ;;  %v1397_v16 = vpop.f32.mrf.mxu0 }
 0x115   : > { %v1085_v1 = vmul.f32 %v1021_v34, %v829_v25  ;;  %v866_v56 = vadd.f32 3.0, %v802_v35  ;;  %v898_v57 = vadd.f32 3.0, %v834_v59  ;;  %v800_v54 = vadd.f32 %v1617_v40, %v729_v60  ;;  %v1429_v28 = vpop.f32.mrf.mxu1 }
 0x116   : > { %v832_v55 = vadd.f32 %v1617_v40, %v761_v50  ;;  %1184 = vst.msk [vmem:[%s1640_s6 + $0x78] sm:$0xff] %vm1168_vm3, %v1119_v62  ;;  %1216 = vst.msk [vmem:[%s1640_s6 + $0x178] sm:$0xff] %vm1168_vm3, %v1151_v63  ;;  %v1117_v4 = vmul.f32 0.16666667, %v1053_v0  ;;  %v732_v6 = vmul.f32 %v1393_v20, %v1612_v38  ;;  %v764_v7 = vmul.f32 %v1425_v21, %v1612_v38  ;;  %v534_v46 = vpop.f32.mrf.mxu0 }
 0x117   : > { %v1149_v5 = vmul.f32 0.16666667, %v1085_v1  ;;  %v930_v8 = vmax.f32 %v866_v56, 0.0  ;;  %v962_v9 = vmax.f32 %v898_v57, 0.0  ;;  %v864_v12 = vadd.f32 3.0, %v800_v54  ;;  %v662_v47 = vpop.f32.mrf.mxu1 }
 0x118   : > { %v896_v13 = vadd.f32 3.0, %v832_v55  ;;  %1182 = vst.msk [vmem:[%s1640_s6 + $0x68] sm:$0xff] %vm1168_vm3, %v1117_v4  ;;  %v803_v14 = vadd.f32 %v1617_v40, %v732_v6  ;;  %v835_v15 = vadd.f32 %v1617_v40, %v764_v7  ;;  %v730_v10 = vmul.f32 %v1612_v38, %v518_v39  ;;  %v1400_v4 = vpop.f32.mrf.mxu0 }
 0x119   : > { %1214 = vst.msk [vmem:[%s1640_s6 + $0x168] sm:$0xff] %vm1168_vm3, %v1149_v5  ;;  %v762_v18 = vmul.f32 %v1612_v38, %v646_v41  ;;  %v994_v19 = vmin.f32 %v930_v8, 6.0  ;;  %v1026_v11 = vmin.f32 %v962_v9, 6.0  ;;  %v928_v20 = vmax.f32 %v864_v12, 0.0  ;;  %v1432_v5 = vpop.f32.mrf.mxu1 }
 0x11a   : > { %v960_v21 = vmax.f32 %v896_v13, 0.0  ;;  %v867_v22 = vadd.f32 3.0, %v803_v14  ;;  %v899_v23 = vadd.f32 3.0, %v835_v15  ;;  %v801_v24 = vadd.f32 %v1617_v40, %v730_v10 }
 0x11b   : > { %v833_v25 = vadd.f32 %v1617_v40, %v762_v18  ;;  %v1058_v26 = vmul.f32 %v994_v19, %v802_v35  ;;  %v1090_v27 = vmul.f32 %v1026_v11, %v834_v59  ;;  %v992_v29 = vmin.f32 %v928_v20, 6.0 }
 0x11c   : > { %v1024_v17 = vmin.f32 %v960_v21, 6.0  ;;  %v931_v30 = vmax.f32 %v867_v22, 0.0  ;;  %v963_v31 = vmax.f32 %v899_v23, 0.0  ;;  %v865_v32 = vadd.f32 3.0, %v801_v24  ;;  %v547_v22 = vpop.f32.mrf.mxu0  ;;  %v675_v23 = vpop.f32.mrf.mxu1 }
 0x11d   : > { %v897_v33 = vadd.f32 3.0, %v833_v25  ;;  %v1122_v36 = vmul.f32 0.16666667, %v1058_v26  ;;  %v1154_v37 = vmul.f32 0.16666667, %v1090_v27  ;;  %v1056_v39 = vmul.f32 %v992_v29, %v800_v54 }
 0x11e   : > { %v1088_v41 = vmul.f32 %v1024_v17, %v832_v55  ;;  %v995_v42 = vmin.f32 %v931_v30, 6.0  ;;  %v1027_v43 = vmin.f32 %v963_v31, 6.0  ;;  %v929_v44 = vmax.f32 %v865_v32, 0.0 }
 0x11f   : > { %v961_v45 = vmax.f32 %v897_v33, 0.0  ;;  %1187 = vst.msk [vmem:[%s1640_s6 + $0x90] sm:$0xff] %vm1168_vm3, %v1122_v36  ;;  %1219 = vst.msk [vmem:[%s1640_s6 + $0x190] sm:$0xff] %vm1168_vm3, %v1154_v37  ;;  %v1120_v48 = vmul.f32 0.16666667, %v1056_v39  ;;  %v735_v52 = vmul.f32 %v1396_v61, %v1612_v38  ;;  %v767_v53 = vmul.f32 %v1428_v51, %v1612_v38 }
 0x120   : > { %v1152_v49 = vmul.f32 0.16666667, %v1088_v41  ;;  %v1059_v58 = vmul.f32 %v995_v42, %v803_v14  ;;  %v1091_v34 = vmul.f32 %v1027_v43, %v835_v15  ;;  %v993_v35 = vmin.f32 %v929_v44, 6.0  ;;  %v1401_v42 = vpop.f32.mrf.mxu0  ;;  %v1433_v43 = vpop.f32.mrf.mxu1 }
 0x121   : > { %v1025_v59 = vmin.f32 %v961_v45, 6.0  ;;  %1185 = vst.msk [vmem:[%s1640_s6 + $0x80] sm:$0xff] %vm1168_vm3, %v1120_v48  ;;  %v806_v60 = vadd.f32 %v1617_v40, %v735_v52  ;;  %v838_v50 = vadd.f32 %v1617_v40, %v767_v53  ;;  %v733_v61 = vmul.f32 %v1612_v38, %v531_v2 }
 0x122   : > { %1217 = vst.msk [vmem:[%s1640_s6 + $0x180] sm:$0xff] %vm1168_vm3, %v1152_v49  ;;  %v765_v51 = vmul.f32 %v1612_v38, %v659_v3  ;;  %v1123_v62 = vmul.f32 0.16666667, %v1059_v58  ;;  %v1155_v63 = vmul.f32 0.16666667, %v1091_v34  ;;  %v1057_v0 = vmul.f32 %v993_v35, %v801_v24 }
 0x123   : > { %v1089_v1 = vmul.f32 %v1025_v59, %v833_v25  ;;  %v870_v56 = vadd.f32 3.0, %v806_v60  ;;  %v902_v57 = vadd.f32 3.0, %v838_v50  ;;  %v804_v54 = vadd.f32 %v1617_v40, %v733_v61 }
 0x124   : > { %v836_v55 = vadd.f32 %v1617_v40, %v765_v51  ;;  %1188 = vst.msk [vmem:[%s1640_s6 + $0x98] sm:$0xff] %vm1168_vm3, %v1123_v62  ;;  %1220 = vst.msk [vmem:[%s1640_s6 + $0x198] sm:$0xff] %vm1168_vm3, %v1155_v63  ;;  %v1121_v6 = vmul.f32 0.16666667, %v1057_v0  ;;  %v736_v8 = vmul.f32 %v1397_v16, %v1612_v38  ;;  %v768_v9 = vmul.f32 %v1429_v28, %v1612_v38  ;;  %v550_v62 = vpop.f32.mrf.mxu0  ;;  %v678_v63 = vpop.f32.mrf.mxu1 }
 0x125   : > { %v1153_v7 = vmul.f32 0.16666667, %v1089_v1  ;;  %v934_v12 = vmax.f32 %v870_v56, 0.0  ;;  %v966_v13 = vmax.f32 %v902_v57, 0.0  ;;  %v868_v2 = vadd.f32 3.0, %v804_v54 }
 0x126   : > { %v900_v3 = vadd.f32 3.0, %v836_v55  ;;  %1186 = vst.msk [vmem:[%s1640_s6 + $0x88] sm:$0xff] %vm1168_vm3, %v1121_v6  ;;  %v807_v14 = vadd.f32 %v1617_v40, %v736_v8  ;;  %v839_v15 = vadd.f32 %v1617_v40, %v768_v9  ;;  %v734_v10 = vmul.f32 %v1612_v38, %v534_v46 }
 0x127   : > { %1218 = vst.msk [vmem:[%s1640_s6 + $0x188] sm:$0xff] %vm1168_vm3, %v1153_v7  ;;  %v766_v18 = vmul.f32 %v1612_v38, %v662_v47  ;;  %v998_v19 = vmin.f32 %v934_v12, 6.0  ;;  %v1030_v11 = vmin.f32 %v966_v13, 6.0  ;;  %v932_v20 = vmax.f32 %v868_v2, 0.0 }
 0x128   : > { %v964_v21 = vmax.f32 %v900_v3, 0.0  ;;  %v871_v24 = vadd.f32 3.0, %v807_v14  ;;  %v903_v25 = vadd.f32 3.0, %v839_v15  ;;  %v805_v26 = vadd.f32 %v1617_v40, %v734_v10 }
 0x129   : > { %v837_v27 = vadd.f32 %v1617_v40, %v766_v18  ;;  %v1062_v29 = vmul.f32 %v998_v19, %v806_v60  ;;  %v1094_v17 = vmul.f32 %v1030_v11, %v838_v50  ;;  %v996_v16 = vmin.f32 %v932_v20, 6.0 }
 0x12a   : > { %v1028_v28 = vmin.f32 %v964_v21, 6.0  ;;  %v935_v30 = vmax.f32 %v871_v24, 0.0  ;;  %v967_v31 = vmax.f32 %v903_v25, 0.0  ;;  %v869_v32 = vadd.f32 3.0, %v805_v26 }
 0x12b   : > { %v901_v33 = vadd.f32 3.0, %v837_v27  ;;  %v1126_v36 = vmul.f32 0.16666667, %v1062_v29  ;;  %v1158_v37 = vmul.f32 0.16666667, %v1094_v17  ;;  %v1060_v39 = vmul.f32 %v996_v16, %v804_v54 }
 0x12c   : > { %v1092_v41 = vmul.f32 %v1028_v28, %v836_v55  ;;  %v999_v44 = vmin.f32 %v935_v30, 6.0  ;;  %v1031_v45 = vmin.f32 %v967_v31, 6.0  ;;  %v933_v48 = vmax.f32 %v869_v32, 0.0 }
 0x12d   : > { %v965_v49 = vmax.f32 %v901_v33, 0.0  ;;  %1191 = vst.msk [vmem:[%s1640_s6 + $0xb0] sm:$0xff] %vm1168_vm3, %v1126_v36  ;;  %1223 = vst.msk [vmem:[%s1640_s6 + $0x1b0] sm:$0xff] %vm1168_vm3, %v1158_v37  ;;  %v1124_v52 = vmul.f32 0.16666667, %v1060_v39  ;;  %v739_v46 = vmul.f32 %v1400_v4, %v1612_v38  ;;  %v771_v47 = vmul.f32 %v1432_v5, %v1612_v38 }
 0x12e   : > { %v1156_v53 = vmul.f32 0.16666667, %v1092_v41  ;;  %v1063_v58 = vmul.f32 %v999_v44, %v807_v14  ;;  %v1095_v34 = vmul.f32 %v1031_v45, %v839_v15  ;;  %v997_v35 = vmin.f32 %v933_v48, 6.0  ;;  %v1404_v14 = vpop.f32.mrf.mxu0  ;;  %v1436_v15 = vpop.f32.mrf.mxu1 }
 0x12f   : > { %v1029_v59 = vmin.f32 %v965_v49, 6.0  ;;  %1189 = vst.msk [vmem:[%s1640_s6 + $0xa0] sm:$0xff] %vm1168_vm3, %v1124_v52  ;;  %v810_v60 = vadd.f32 %v1617_v40, %v739_v46  ;;  %v842_v50 = vadd.f32 %v1617_v40, %v771_v47  ;;  %v737_v61 = vmul.f32 %v1612_v38, %v547_v22 }
 0x130   : > { %1221 = vst.msk [vmem:[%s1640_s6 + $0x1a0] sm:$0xff] %vm1168_vm3, %v1156_v53  ;;  %v769_v51 = vmul.f32 %v1612_v38, %v675_v23  ;;  %v1127_v0 = vmul.f32 0.16666667, %v1063_v58  ;;  %v1159_v1 = vmul.f32 0.16666667, %v1095_v34  ;;  %v1061_v56 = vmul.f32 %v997_v35, %v805_v26  ;;  %v563_v30 = vpop.f32.mrf.mxu0  ;;  %v691_v31 = vpop.f32.mrf.mxu1 }
 0x131   : > { %v1093_v57 = vmul.f32 %v1029_v59, %v837_v27  ;;  %v874_v54 = vadd.f32 3.0, %v810_v60  ;;  %v906_v55 = vadd.f32 3.0, %v842_v50  ;;  %v808_v4 = vadd.f32 %v1617_v40, %v737_v61 }
 0x132   : > { %v840_v5 = vadd.f32 %v1617_v40, %v769_v51  ;;  %1192 = vst.msk [vmem:[%s1640_s6 + $0xb8] sm:$0xff] %vm1168_vm3, %v1127_v0  ;;  %1224 = vst.msk [vmem:[%s1640_s6 + $0x1b8] sm:$0xff] %vm1168_vm3, %v1159_v1  ;;  %v1125_v6 = vmul.f32 0.16666667, %v1061_v56  ;;  %v740_v8 = vmul.f32 %v1401_v42, %v1612_v38  ;;  %v772_v9 = vmul.f32 %v1433_v43, %v1612_v38  ;;  %v1405_v58 = vpop.f32.mrf.mxu0  ;;  %v1437_v34 = vpop.f32.mrf.mxu1 }
 0x133   : > { %v1157_v7 = vmul.f32 0.16666667, %v1093_v57  ;;  %v938_v12 = vmax.f32 %v874_v54, 0.0  ;;  %v970_v13 = vmax.f32 %v906_v55, 0.0  ;;  %v872_v2 = vadd.f32 3.0, %v808_v4 }
 0x134   : > { %v904_v3 = vadd.f32 3.0, %v840_v5  ;;  %1190 = vst.msk [vmem:[%s1640_s6 + $0xa8] sm:$0xff] %vm1168_vm3, %v1125_v6  ;;  %v811_v10 = vadd.f32 %v1617_v40, %v740_v8  ;;  %v843_v18 = vadd.f32 %v1617_v40, %v772_v9  ;;  %v738_v19 = vmul.f32 %v1612_v38, %v550_v62  ;;  %v1454_v9 = vld [vmem:[%s1931_s2] ss:$0 sm:$0xff] }
 0x135   : > { %1222 = vst.msk [vmem:[%s1640_s6 + $0x1a8] sm:$0xff] %vm1168_vm3, %v1157_v7  ;;  %v770_v11 = vmul.f32 %v1612_v38, %v678_v63  ;;  %v1002_v20 = vmin.f32 %v938_v12, 6.0  ;;  %v1034_v21 = vmin.f32 %v970_v13, 6.0  ;;  %v936_v22 = vmax.f32 %v872_v2, 0.0  ;;  %v566_v7 = vpop.f32.mrf.mxu0 }
 0x136   : > { %v968_v23 = vmax.f32 %v904_v3, 0.0  ;;  %v875_v24 = vadd.f32 3.0, %v811_v10  ;;  %v907_v25 = vadd.f32 3.0, %v843_v18  ;;  %v809_v26 = vadd.f32 %v1617_v40, %v738_v19 }
 0x137   : > { %v841_v27 = vadd.f32 %v1617_v40, %v770_v11  ;;  %v1066_v29 = vmul.f32 %v1002_v20, %v810_v60  ;;  %v1098_v17 = vmul.f32 %v1034_v21, %v842_v50  ;;  %v1000_v16 = vmin.f32 %v936_v22, 6.0 }
 0x138   : > { %v1032_v28 = vmin.f32 %v968_v23, 6.0  ;;  %v939_v32 = vmax.f32 %v875_v24, 0.0  ;;  %v971_v33 = vmax.f32 %v907_v25, 0.0  ;;  %v873_v36 = vadd.f32 3.0, %v809_v26 }
 0x139   : > { %v905_v37 = vadd.f32 3.0, %v841_v27  ;;  %v1130_v39 = vmul.f32 0.16666667, %v1066_v29  ;;  %v1162_v41 = vmul.f32 0.16666667, %v1098_v17  ;;  %v1064_v42 = vmul.f32 %v1000_v16, %v808_v4 }
 0x13a   : > { %v1096_v43 = vmul.f32 %v1032_v28, %v840_v5  ;;  %v1003_v44 = vmin.f32 %v939_v32, 6.0  ;;  %v1035_v45 = vmin.f32 %v971_v33, 6.0  ;;  %v937_v48 = vmax.f32 %v873_v36, 0.0  ;;  %v1453_v4 = vld [vmem:[%s1932_s3] ss:$0 sm:$0xff] }
 0x13b   : > { %v969_v49 = vmax.f32 %v905_v37, 0.0  ;;  %1195 = vst.msk [vmem:[%s1640_s6 + $0xd0] sm:$0xff] %vm1168_vm3, %v1130_v39  ;;  %1227 = vst.msk [vmem:[%s1640_s6 + $0x1d0] sm:$0xff] %vm1168_vm3, %v1162_v41  ;;  %v1128_v52 = vmul.f32 0.16666667, %v1064_v42  ;;  %v743_v46 = vmul.f32 %v1404_v14, %v1612_v38  ;;  %v775_v47 = vmul.f32 %v1436_v15, %v1612_v38 }
 0x13c   : > { %v1160_v53 = vmul.f32 0.16666667, %v1096_v43  ;;  %v1067_v35 = vmul.f32 %v1003_v44, %v811_v10  ;;  %v1099_v59 = vmul.f32 %v1035_v45, %v843_v18  ;;  %v1001_v60 = vmin.f32 %v937_v48, 6.0 }
 0x13d   : > { %v1033_v50 = vmin.f32 %v969_v49, 6.0  ;;  %1193 = vst.msk [vmem:[%s1640_s6 + $0xc0] sm:$0xff] %vm1168_vm3, %v1128_v52  ;;  %v814_v61 = vadd.f32 %v1617_v40, %v743_v46  ;;  %v846_v51 = vadd.f32 %v1617_v40, %v775_v47  ;;  %v741_v62 = vmul.f32 %v1612_v38, %v563_v30  ;;  %v694_v40 = vpop.f32.mrf.mxu1 }
 0x13e   : > { %1225 = vst.msk [vmem:[%s1640_s6 + $0x1c0] sm:$0xff] %vm1168_vm3, %v1160_v53  ;;  %v773_v63 = vmul.f32 %v1612_v38, %v691_v31  ;;  %v1131_v0 = vmul.f32 0.16666667, %v1067_v35  ;;  %v1163_v1 = vmul.f32 0.16666667, %v1099_v59  ;;  %v1065_v56 = vmul.f32 %v1001_v60, %v809_v26 }
 0x13f   : > { %v1097_v57 = vmul.f32 %v1033_v50, %v841_v27  ;;  %v878_v54 = vadd.f32 3.0, %v814_v61  ;;  %v910_v55 = vadd.f32 3.0, %v846_v51  ;;  %v812_v5 = vadd.f32 %v1453_v4, %v741_v62 }
 0x140   : > { %v844_v6 = vadd.f32 %v1453_v4, %v773_v63  ;;  %1196 = vst.msk [vmem:[%s1640_s6 + $0xd8] sm:$0xff] %vm1168_vm3, %v1131_v0  ;;  %1228 = vst.msk [vmem:[%s1640_s6 + $0x1d8] sm:$0xff] %vm1168_vm3, %v1163_v1  ;;  %v1129_v38 = vmul.f32 0.16666667, %v1065_v56  ;;  %v744_v12 = vmul.f32 %v1454_v9, %v1405_v58  ;;  %v776_v13 = vmul.f32 %v1454_v9, %v1437_v34 }
 0x141   : > { %v1161_v8 = vmul.f32 0.16666667, %v1097_v57  ;;  %v942_v2 = vmax.f32 %v878_v54, 0.0  ;;  %v974_v3 = vmax.f32 %v910_v55, 0.0  ;;  %v876_v14 = vadd.f32 3.0, %v812_v5 }
 0x142   : > { %v908_v15 = vadd.f32 3.0, %v844_v6  ;;  %1194 = vst.msk [vmem:[%s1640_s6 + $0xc8] sm:$0xff] %vm1168_vm3, %v1129_v38  ;;  %v815_v10 = vadd.f32 %v1453_v4, %v744_v12  ;;  %v847_v18 = vadd.f32 %v1453_v4, %v776_v13  ;;  %v742_v19 = vmul.f32 %v1454_v9, %v566_v7 }
 0x143   : > { %1226 = vst.msk [vmem:[%s1640_s6 + $0x1c8] sm:$0xff] %vm1168_vm3, %v1161_v8  ;;  %v774_v11 = vmul.f32 %v1454_v9, %v694_v40  ;;  %v1006_v20 = vmin.f32 %v942_v2, 6.0  ;;  %v1038_v21 = vmin.f32 %v974_v3, 6.0  ;;  %v940_v22 = vmax.f32 %v876_v14, 0.0 }
 0x144   : > { %v972_v23 = vmax.f32 %v908_v15, 0.0  ;;  %v879_v24 = vadd.f32 3.0, %v815_v10  ;;  %v911_v25 = vadd.f32 3.0, %v847_v18  ;;  %v813_v26 = vadd.f32 %v1453_v4, %v742_v19 }
 0x145   : > { %v845_v27 = vadd.f32 %v1453_v4, %v774_v11  ;;  %v1070_v29 = vmul.f32 %v1006_v20, %v814_v61  ;;  %v1102_v17 = vmul.f32 %v1038_v21, %v846_v51  ;;  %v1004_v16 = vmin.f32 %v940_v22, 6.0 }
 0x146   : > { %v1036_v28 = vmin.f32 %v972_v23, 6.0  ;;  %v943_v30 = vmax.f32 %v879_v24, 0.0  ;;  %v975_v31 = vmax.f32 %v911_v25, 0.0  ;;  %v877_v32 = vadd.f32 3.0, %v813_v26 }
 0x147   : > { %v909_v33 = vadd.f32 3.0, %v845_v27  ;;  %v1134_v36 = vmul.f32 0.16666667, %v1070_v29  ;;  %v1166_v37 = vmul.f32 0.16666667, %v1102_v17  ;;  %v1068_v39 = vmul.f32 %v1004_v16, %v812_v5 }
 0x148   : > { %v1100_v41 = vmul.f32 %v1036_v28, %v844_v6  ;;  %v1007_v42 = vmin.f32 %v943_v30, 6.0  ;;  %v1039_v43 = vmin.f32 %v975_v31, 6.0  ;;  %v941_v44 = vmax.f32 %v877_v32, 0.0 }
 0x149   : > { %v973_v45 = vmax.f32 %v909_v33, 0.0  ;;  %1199 = vst.msk [vmem:[%s1640_s6 + $0xf0] sm:$0xff] %vm1168_vm3, %v1134_v36  ;;  %1231 = vst.msk [vmem:[%s1640_s6 + $0x1f0] sm:$0xff] %vm1168_vm3, %v1166_v37  ;;  %v1132_v48 = vmul.f32 0.16666667, %v1068_v39 }
 0x14a   : > { %v1164_v49 = vmul.f32 0.16666667, %v1100_v41  ;;  %v1071_v52 = vmul.f32 %v1007_v42, %v815_v10  ;;  %v1103_v53 = vmul.f32 %v1039_v43, %v847_v18  ;;  %v1005_v46 = vmin.f32 %v941_v44, 6.0 }
 0x14b   : > { %v1037_v47 = vmin.f32 %v973_v45, 6.0  ;;  %1197 = vst.msk [vmem:[%s1640_s6 + $0xe0] sm:$0xff] %vm1168_vm3, %v1132_v48 }
 0x14c   : > { %1229 = vst.msk [vmem:[%s1640_s6 + $0x1e0] sm:$0xff] %vm1168_vm3, %v1164_v49  ;;  %v1135_v58 = vmul.f32 0.16666667, %v1071_v52  ;;  %v1167_v34 = vmul.f32 0.16666667, %v1103_v53  ;;  %v1069_v35 = vmul.f32 %v1005_v46, %v813_v26 }
 0x14d   : > { %v1101_v59 = vmul.f32 %v1037_v47, %v845_v27 }
 0x14e   : > { %1200 = vst.msk [vmem:[%s1640_s6 + $0xf8] sm:$0xff] %vm1168_vm3, %v1135_v58  ;;  %1232 = vst.msk [vmem:[%s1640_s6 + $0x1f8] sm:$0xff] %vm1168_vm3, %v1167_v34  ;;  %v1133_v60 = vmul.f32 0.16666667, %v1069_v35 }
 0x14f   : > { %v1165_v50 = vmul.f32 0.16666667, %v1101_v59 }
 0x150   : > { %1198 = vst.msk [vmem:[%s1640_s6 + $0xe8] sm:$0xff] %vm1168_vm3, %v1133_v60 }
 0x151   : > { %1230 = vst.msk [vmem:[%s1640_s6 + $0x1e8] sm:$0xff] %vm1168_vm3, %v1165_v50 }
 0x152 PF: > { %s14_s15 = sadd.s32 1, %s1461_s15  }
 0x153   : > { %p11_p4 = scmp.ge.s32.totalorder %s14_s15, 6  }
 0x155   :  { %13 = sbr.rel (!%p11_p4) target bundleno = 1 (0x1), region = 66 }

</bundles_post_ra>
